<compile_context>
chip_gen: v7x
topology: tpu7x:2x2x1
jax: 0.10.0
libtpu: 0.0.40
codegen_flags: <defaults>
</compile_context>

<pallas_src>
import functools

import jax
import jax.numpy as jnp
from jax.experimental import pallas as pl
from jax.experimental.pallas import tpu as pltpu


def _spatial_attention_kernel(x_ref,
                              wqkv_ref, bqkv_ref,
                              w1_ref, b1_ref,
                              w2_ref, b2_ref,
                              out_ref,
                              *, T, N, num_heads, head_dim):
    f32 = jnp.float32
    bf16 = jnp.bfloat16
    D = num_heads * head_dim

    # x arrives f32 straight from HBM; cast once in-register for the MXU.
    x = x_ref[0].astype(bf16)                                   # [T*N, C]

    # Fused Q/K/V projection: relu(BN(conv1x1(x))), BN folded into W/b and the
    # 1/sqrt(d) attention scale pre-folded into the Q columns by the wrapper.
    qkv = jnp.maximum(
        jnp.dot(x, wqkv_ref[...], preferred_element_type=f32) + bqkv_ref[...],
        0.0)                                                    # [T*N, 3D] f32
    qkv3 = qkv.astype(bf16).reshape(T, N, 3 * D)                # [T, N, 3D]

    # Attention batched over T; heads are static lane slices (H is tiny).
    head_outs = []
    for h in range(num_heads):
        lo = h * head_dim
        hi = lo + head_dim
        qh = qkv3[:, :, lo:hi]                                  # [T, N, d]
        kh = qkv3[:, :, D + lo:D + hi]                          # [T, N, d]
        vh = qkv3[:, :, 2 * D + lo:2 * D + hi]                  # [T, N, d]
        s = jnp.einsum('tnd,tmd->tnm', qh, kh,
                       preferred_element_type=f32)              # [T, N, N] f32
        s = s - jnp.max(s, axis=-1, keepdims=True)
        p = jnp.exp(s)
        p = p * pl.reciprocal(jnp.sum(p, axis=-1, keepdims=True), approx=True)
        head_outs.append(
            jnp.einsum('tnm,tmd->tnd', p.astype(bf16), vh,
                       preferred_element_type=f32))             # [T, N, d] f32

    # Head-major concat matches torch.cat(torch.chunk(...)) column ordering.
    attn = jnp.concatenate(head_outs, axis=-1).reshape(T * N, D)  # [T*N, D] f32

    # Output FC: [D -> D, ReLU] then [D -> D, None] (BN folded).
    h1 = jnp.maximum(
        jnp.dot(attn.astype(bf16), w1_ref[...], preferred_element_type=f32)
        + b1_ref[...], 0.0)
    y = (jnp.dot(h1.astype(bf16), w2_ref[...], preferred_element_type=f32)
         + b2_ref[...])

    out_ref[0] = y.astype(out_ref.dtype)


def spatial_attention(x, params, num_heads):
    """x: [B, T, N, C] float32 -> [B, T, N, D] float32."""
    B, T, N, C = x.shape
    D = params["wq"].shape[1]
    assert D % num_heads == 0
    head_dim = D // num_heads
    scale = 1.0 / (float(head_dim) ** 0.5)

    f32 = jnp.float32
    bf16 = jnp.bfloat16

    # Fold the 1/sqrt(d) attention scale into the Q projection (exact: ReLU is
    # positively homogeneous and scale > 0), then fuse Q/K/V weights into one
    # [C, 3D] matrix.  Matmul weights are bf16; biases stay f32 (added to the
    # f32 accumulator).
    wqkv = jnp.concatenate(
        [params["wq"] * scale, params["wk"], params["wv"]], axis=1).astype(bf16)
    bqkv = jnp.concatenate(
        [params["bq"] * scale, params["bk"], params["bv"]], axis=1).astype(f32)
    w1 = params["w1"].astype(bf16)
    b1 = params["b1"].astype(f32)
    w2 = params["w2"].astype(bf16)
    b2 = params["b2"].astype(f32)

    # Collapse (T, N) into one row-batched slab per batch element (free,
    # contiguous reshape; no dtype cast pass over x in HBM).
    x2 = x.reshape(B, T * N, C)

    kernel = functools.partial(
        _spatial_attention_kernel, T=T, N=N,
        num_heads=num_heads, head_dim=head_dim)

    def replicated(shape):
        zeros = (0,) * len(shape)
        return pl.BlockSpec(shape, lambda b, _z=zeros: _z)

    in_specs = [
        pl.BlockSpec((1, T * N, C), lambda b: (b, 0, 0)),
        replicated((C, 3 * D)), replicated((1, 3 * D)),   # fused Wqkv, bqkv
        replicated((D, D)), replicated((1, D)),           # W1, b1
        replicated((D, D)), replicated((1, D)),           # W2, b2
    ]

    out = pl.pallas_call(
        kernel,
        out_shape=jax.ShapeDtypeStruct((B, T * N, D), jnp.float32),
        grid=(B,),
        in_specs=in_specs,
        out_specs=pl.BlockSpec((1, T * N, D), lambda b: (b, 0, 0)),
        compiler_params=pltpu.CompilerParams(
            dimension_semantics=("parallel",)),
    )(x2, wqkv, bqkv, w1, b1, w2, b2)

    return out.reshape(B, T, N, D)


# ---------------------------------------------------------------------------
# Deterministic parameter construction (synthetic weights, BN folded).
# ---------------------------------------------------------------------------
def _fold_bn(w, b, gamma, beta, mean, var, eps=1e-5):
    s = gamma / jnp.sqrt(var + eps)
    return w * s[None, :], (b - mean) * s + beta


def make_params(key, emb_size, D):
    keys = jax.random.split(key, 20)
    ki = iter(keys)

    def layer(c_in, c_out):
        w = jax.random.normal(next(ki), (c_in, c_out), jnp.float32) * 0.1
        b = jax.random.normal(next(ki), (c_out,), jnp.float32) * 0.05
        gamma = 1.0 + 0.1 * jax.random.normal(next(ki), (c_out,), jnp.float32)
        beta = 0.05 * jax.random.normal(next(ki), (c_out,), jnp.float32)
        mean = 0.02 * jnp.arange(c_out, dtype=jnp.float32)
        var = 1.0 + 0.01 * jnp.arange(c_out, dtype=jnp.float32)
        w_eff, b_eff = _fold_bn(w, b, gamma, beta, mean, var)
        return w_eff, b_eff.reshape(1, c_out)

    wq, bq = layer(emb_size, D)
    wk, bk = layer(emb_size, D)
    wv, bv = layer(emb_size, D)
    w1, b1 = layer(D, D)
    w2, b2 = layer(D, D)
    return dict(wq=wq, bq=bq, wk=wk, bk=bk, wv=wv, bv=bv,
                w1=w1, b1=b1, w2=w2, b2=b2)


# ---------------------------------------------------------------------------
# Pure-JAX f32 reference (mirrors the PyTorch forward) for a correctness check.
# Uses the *unscaled, unfused* params and explicit /sqrt(d), so it also verifies
# the scale-folding and QKV fusion done in the wrapper.
# ---------------------------------------------------------------------------
def reference(x, params, num_heads):
    relu = lambda a: jnp.maximum(a, 0.0)
    q = relu(x @ params["wq"] + params["bq"])
    k = relu(x @ params["wk"] + params["bk"])
    v = relu(x @ params["wv"] + params["bv"])
    B, T, N, D = q.shape
    d = D // num_heads
    # torch.cat(torch.chunk(q, K, dim=-1), dim=0) -> [K*B, T, N, d], head-major
    split = lambda a: jnp.concatenate(jnp.split(a, num_heads, axis=-1), axis=0)
    q, k, v = split(q), split(k), split(v)
    att = jnp.einsum("btnd,btmd->btnm", q, k) / (d ** 0.5)
    att = jax.nn.softmax(att, axis=-1)
    o = jnp.einsum("btnm,btmd->btnd", att, v)
    o = jnp.concatenate(jnp.split(o, num_heads, axis=0), axis=-1)  # [B, T, N, D]
    h1 = relu(o @ params["w1"] + params["b1"])
    return h1 @ params["w2"] + params["b2"]


if __name__ == "__main__":
    # conf = {'emb_size': 32, 'num_heads': 4}; D = 32; d = D // K = 8
    B, T, N = 2, 4, 16
    emb_size, D, num_heads = 32, 32, 4

    key = jax.random.PRNGKey(0)
    kx, kp = jax.random.split(key)
    x = jax.random.normal(kx, (B, T, N, emb_size), jnp.float32)
    params = make_params(kp, emb_size, D)

    out = spatial_attention(x, params, num_heads)
    out = jax.block_until_ready(out)

    ref = reference(x, params, num_heads)
    assert out.shape == (B, T, N, D)
    # Matmul operands are bf16 (f32 accumulate) and the softmax divide uses the
    # approximate EUP reciprocal, so use a loose-but-tight-enough tolerance.
    assert jnp.allclose(out, ref, atol=5e-2, rtol=5e-2), "mismatch vs reference"

    print("KERNEL_OK")
</pallas_src>

<mosaic_0001>
module attributes {stable_mosaic.version = 11 : i64} {
  func.func @_spatial_attention_kernel(%arg0: i32, %arg1: memref<1x64x32xf32, #tpu.memory_space<vmem>>, %arg2: memref<32x96xbf16, #tpu.memory_space<vmem>>, %arg3: memref<1x96xf32, #tpu.memory_space<vmem>>, %arg4: memref<32x32xbf16, #tpu.memory_space<vmem>>, %arg5: memref<1x32xf32, #tpu.memory_space<vmem>>, %arg6: memref<32x32xbf16, #tpu.memory_space<vmem>>, %arg7: memref<1x32xf32, #tpu.memory_space<vmem>>, %arg8: memref<1x64x32xf32, #tpu.memory_space<vmem>>) attributes {dimension_semantics = [#tpu.dimension_semantics<parallel>], iteration_bounds = array<i64: 2>, scalar_prefetch = 0 : i64, scratch_operands = 0 : i64, tpu.core_type = #tpu.core_type<tc>, window_params = [{transform_indices = @transform_0, window_bounds = array<i64: 1, 64, 32>}, {pipeline_mode = #tpu.pipeline_mode<synchronous>, transform_indices = @transform_1, window_bounds = array<i64: 32, 96>}, {pipeline_mode = #tpu.pipeline_mode<synchronous>, transform_indices = @transform_2, window_bounds = array<i64: 1, 96>}, {pipeline_mode = #tpu.pipeline_mode<synchronous>, transform_indices = @transform_3, window_bounds = array<i64: 32, 32>}, {pipeline_mode = #tpu.pipeline_mode<synchronous>, transform_indices = @transform_4, window_bounds = array<i64: 1, 32>}, {pipeline_mode = #tpu.pipeline_mode<synchronous>, transform_indices = @transform_5, window_bounds = array<i64: 32, 32>}, {pipeline_mode = #tpu.pipeline_mode<synchronous>, transform_indices = @transform_6, window_bounds = array<i64: 1, 32>}, {transform_indices = @transform_7, window_bounds = array<i64: 1, 64, 32>}]} {
    %c0 = arith.constant 0 : index
    %c0_0 = arith.constant 0 : index
    %c0_1 = arith.constant 0 : index
    %0 = vector.load %arg1[%c0, %c0_0, %c0_1] : memref<1x64x32xf32, #tpu.memory_space<vmem>>, vector<1x64x32xf32>
    %1 = vector.shape_cast %0 : vector<1x64x32xf32> to vector<64x32xf32>
    %2 = arith.truncf %1 : vector<64x32xf32> to vector<64x32xbf16>
    %c0_2 = arith.constant 0 : index
    %c0_3 = arith.constant 0 : index
    %3 = vector.load %arg2[%c0_2, %c0_3] : memref<32x96xbf16, #tpu.memory_space<vmem>>, vector<32x96xbf16>
    %cst = arith.constant dense<0.000000e+00> : vector<64x96xf32>
    %4 = tpu.matmul %2, %3, %cst {dimension_numbers = #tpu.dot_dimension_numbers<[1], [0], [0], [1], [0, 0, 1, 1], [], []>} : vector<64x32xbf16>, vector<32x96xbf16>, vector<64x96xf32> -> vector<64x96xf32>
    %c0_4 = arith.constant 0 : index
    %c0_5 = arith.constant 0 : index
    %5 = vector.load %arg3[%c0_4, %c0_5] : memref<1x96xf32, #tpu.memory_space<vmem>>, vector<1x96xf32>
    %6 = vector.broadcast %5 : vector<1x96xf32> to vector<64x96xf32>
    %7 = arith.addf %4, %6 : vector<64x96xf32>
    %cst_6 = arith.constant 0.000000e+00 : f32
    %8 = vector.broadcast %cst_6 : f32 to vector<64x96xf32>
    %9 = arith.maximumf %7, %8 : vector<64x96xf32>
    %10 = arith.truncf %9 : vector<64x96xf32> to vector<64x96xbf16>
    %11 = vector.shape_cast %10 : vector<64x96xbf16> to vector<4x16x96xbf16>
    %12 = vector.extract_strided_slice %11 {offsets = [0, 0, 0], sizes = [4, 16, 8], strides = [1, 1, 1]} : vector<4x16x96xbf16> to vector<4x16x8xbf16>
    %13 = vector.extract_strided_slice %11 {offsets = [0, 0, 32], sizes = [4, 16, 8], strides = [1, 1, 1]} : vector<4x16x96xbf16> to vector<4x16x8xbf16>
    %14 = vector.extract_strided_slice %11 {offsets = [0, 0, 64], sizes = [4, 16, 8], strides = [1, 1, 1]} : vector<4x16x96xbf16> to vector<4x16x8xbf16>
    "tpu.trace_start"() <{level = 10 : i32, message = "tnd,tmd->tnm"}> : () -> ()
    %cst_7 = arith.constant dense<0.000000e+00> : vector<4x16x16xf32>
    %15 = tpu.matmul %12, %13, %cst_7 {dimension_numbers = #tpu.dot_dimension_numbers<[2], [2], [1], [1], [0, 0, 0, 1, 1, 1], [0], [0]>} : vector<4x16x8xbf16>, vector<4x16x8xbf16>, vector<4x16x16xf32> -> vector<4x16x16xf32>
    "tpu.trace_stop"() : () -> ()
    %cst_8 = arith.constant dense<0xFF800000> : vector<4x16xf32>
    %16 = vector.multi_reduction <maximumf>, %15, %cst_8 [2] : vector<4x16x16xf32> to vector<4x16xf32>
    %17 = vector.shape_cast %16 : vector<4x16xf32> to vector<4x16x1xf32>
    %18 = vector.broadcast %17 : vector<4x16x1xf32> to vector<4x16x16xf32>
    %19 = arith.subf %15, %18 : vector<4x16x16xf32>
    %20 = math.exp %19 : vector<4x16x16xf32>
    %cst_9 = arith.constant dense<0.000000e+00> : vector<4x16xf32>
    %21 = vector.multi_reduction <add>, %20, %cst_9 [2] : vector<4x16x16xf32> to vector<4x16xf32>
    %22 = vector.shape_cast %21 : vector<4x16xf32> to vector<4x16x1xf32>
    %23 = tpu.reciprocal %22 {approx = true} : vector<4x16x1xf32> -> vector<4x16x1xf32>
    %24 = vector.broadcast %23 : vector<4x16x1xf32> to vector<4x16x16xf32>
    %25 = arith.mulf %20, %24 : vector<4x16x16xf32>
    %26 = arith.truncf %25 : vector<4x16x16xf32> to vector<4x16x16xbf16>
    "tpu.trace_start"() <{level = 10 : i32, message = "tnm,tmd->tnd"}> : () -> ()
    %cst_10 = arith.constant dense<0.000000e+00> : vector<4x16x8xf32>
    %27 = tpu.matmul %26, %14, %cst_10 {dimension_numbers = #tpu.dot_dimension_numbers<[2], [1], [1], [2], [0, 0, 0, 1, 1, 2], [0], [0]>} : vector<4x16x16xbf16>, vector<4x16x8xbf16>, vector<4x16x8xf32> -> vector<4x16x8xf32>
    "tpu.trace_stop"() : () -> ()
    %28 = vector.extract_strided_slice %11 {offsets = [0, 0, 8], sizes = [4, 16, 8], strides = [1, 1, 1]} : vector<4x16x96xbf16> to vector<4x16x8xbf16>
    %29 = vector.extract_strided_slice %11 {offsets = [0, 0, 40], sizes = [4, 16, 8], strides = [1, 1, 1]} : vector<4x16x96xbf16> to vector<4x16x8xbf16>
    %30 = vector.extract_strided_slice %11 {offsets = [0, 0, 72], sizes = [4, 16, 8], strides = [1, 1, 1]} : vector<4x16x96xbf16> to vector<4x16x8xbf16>
    "tpu.trace_start"() <{level = 10 : i32, message = "tnd,tmd->tnm"}> : () -> ()
    %cst_11 = arith.constant dense<0.000000e+00> : vector<4x16x16xf32>
    %31 = tpu.matmul %28, %29, %cst_11 {dimension_numbers = #tpu.dot_dimension_numbers<[2], [2], [1], [1], [0, 0, 0, 1, 1, 1], [0], [0]>} : vector<4x16x8xbf16>, vector<4x16x8xbf16>, vector<4x16x16xf32> -> vector<4x16x16xf32>
    "tpu.trace_stop"() : () -> ()
    %cst_12 = arith.constant dense<0xFF800000> : vector<4x16xf32>
    %32 = vector.multi_reduction <maximumf>, %31, %cst_12 [2] : vector<4x16x16xf32> to vector<4x16xf32>
    %33 = vector.shape_cast %32 : vector<4x16xf32> to vector<4x16x1xf32>
    %34 = vector.broadcast %33 : vector<4x16x1xf32> to vector<4x16x16xf32>
    %35 = arith.subf %31, %34 : vector<4x16x16xf32>
    %36 = math.exp %35 : vector<4x16x16xf32>
    %cst_13 = arith.constant dense<0.000000e+00> : vector<4x16xf32>
    %37 = vector.multi_reduction <add>, %36, %cst_13 [2] : vector<4x16x16xf32> to vector<4x16xf32>
    %38 = vector.shape_cast %37 : vector<4x16xf32> to vector<4x16x1xf32>
    %39 = tpu.reciprocal %38 {approx = true} : vector<4x16x1xf32> -> vector<4x16x1xf32>
    %40 = vector.broadcast %39 : vector<4x16x1xf32> to vector<4x16x16xf32>
    %41 = arith.mulf %36, %40 : vector<4x16x16xf32>
    %42 = arith.truncf %41 : vector<4x16x16xf32> to vector<4x16x16xbf16>
    "tpu.trace_start"() <{level = 10 : i32, message = "tnm,tmd->tnd"}> : () -> ()
    %cst_14 = arith.constant dense<0.000000e+00> : vector<4x16x8xf32>
    %43 = tpu.matmul %42, %30, %cst_14 {dimension_numbers = #tpu.dot_dimension_numbers<[2], [1], [1], [2], [0, 0, 0, 1, 1, 2], [0], [0]>} : vector<4x16x16xbf16>, vector<4x16x8xbf16>, vector<4x16x8xf32> -> vector<4x16x8xf32>
    "tpu.trace_stop"() : () -> ()
    %44 = vector.extract_strided_slice %11 {offsets = [0, 0, 16], sizes = [4, 16, 8], strides = [1, 1, 1]} : vector<4x16x96xbf16> to vector<4x16x8xbf16>
    %45 = vector.extract_strided_slice %11 {offsets = [0, 0, 48], sizes = [4, 16, 8], strides = [1, 1, 1]} : vector<4x16x96xbf16> to vector<4x16x8xbf16>
    %46 = vector.extract_strided_slice %11 {offsets = [0, 0, 80], sizes = [4, 16, 8], strides = [1, 1, 1]} : vector<4x16x96xbf16> to vector<4x16x8xbf16>
    "tpu.trace_start"() <{level = 10 : i32, message = "tnd,tmd->tnm"}> : () -> ()
    %cst_15 = arith.constant dense<0.000000e+00> : vector<4x16x16xf32>
    %47 = tpu.matmul %44, %45, %cst_15 {dimension_numbers = #tpu.dot_dimension_numbers<[2], [2], [1], [1], [0, 0, 0, 1, 1, 1], [0], [0]>} : vector<4x16x8xbf16>, vector<4x16x8xbf16>, vector<4x16x16xf32> -> vector<4x16x16xf32>
    "tpu.trace_stop"() : () -> ()
    %cst_16 = arith.constant dense<0xFF800000> : vector<4x16xf32>
    %48 = vector.multi_reduction <maximumf>, %47, %cst_16 [2] : vector<4x16x16xf32> to vector<4x16xf32>
    %49 = vector.shape_cast %48 : vector<4x16xf32> to vector<4x16x1xf32>
    %50 = vector.broadcast %49 : vector<4x16x1xf32> to vector<4x16x16xf32>
    %51 = arith.subf %47, %50 : vector<4x16x16xf32>
    %52 = math.exp %51 : vector<4x16x16xf32>
    %cst_17 = arith.constant dense<0.000000e+00> : vector<4x16xf32>
    %53 = vector.multi_reduction <add>, %52, %cst_17 [2] : vector<4x16x16xf32> to vector<4x16xf32>
    %54 = vector.shape_cast %53 : vector<4x16xf32> to vector<4x16x1xf32>
    %55 = tpu.reciprocal %54 {approx = true} : vector<4x16x1xf32> -> vector<4x16x1xf32>
    %56 = vector.broadcast %55 : vector<4x16x1xf32> to vector<4x16x16xf32>
    %57 = arith.mulf %52, %56 : vector<4x16x16xf32>
    %58 = arith.truncf %57 : vector<4x16x16xf32> to vector<4x16x16xbf16>
    "tpu.trace_start"() <{level = 10 : i32, message = "tnm,tmd->tnd"}> : () -> ()
    %cst_18 = arith.constant dense<0.000000e+00> : vector<4x16x8xf32>
    %59 = tpu.matmul %58, %46, %cst_18 {dimension_numbers = #tpu.dot_dimension_numbers<[2], [1], [1], [2], [0, 0, 0, 1, 1, 2], [0], [0]>} : vector<4x16x16xbf16>, vector<4x16x8xbf16>, vector<4x16x8xf32> -> vector<4x16x8xf32>
    "tpu.trace_stop"() : () -> ()
    %60 = vector.extract_strided_slice %11 {offsets = [0, 0, 24], sizes = [4, 16, 8], strides = [1, 1, 1]} : vector<4x16x96xbf16> to vector<4x16x8xbf16>
    %61 = vector.extract_strided_slice %11 {offsets = [0, 0, 56], sizes = [4, 16, 8], strides = [1, 1, 1]} : vector<4x16x96xbf16> to vector<4x16x8xbf16>
    %62 = vector.extract_strided_slice %11 {offsets = [0, 0, 88], sizes = [4, 16, 8], strides = [1, 1, 1]} : vector<4x16x96xbf16> to vector<4x16x8xbf16>
    "tpu.trace_start"() <{level = 10 : i32, message = "tnd,tmd->tnm"}> : () -> ()
    %cst_19 = arith.constant dense<0.000000e+00> : vector<4x16x16xf32>
    %63 = tpu.matmul %60, %61, %cst_19 {dimension_numbers = #tpu.dot_dimension_numbers<[2], [2], [1], [1], [0, 0, 0, 1, 1, 1], [0], [0]>} : vector<4x16x8xbf16>, vector<4x16x8xbf16>, vector<4x16x16xf32> -> vector<4x16x16xf32>
    "tpu.trace_stop"() : () -> ()
    %cst_20 = arith.constant dense<0xFF800000> : vector<4x16xf32>
    %64 = vector.multi_reduction <maximumf>, %63, %cst_20 [2] : vector<4x16x16xf32> to vector<4x16xf32>
    %65 = vector.shape_cast %64 : vector<4x16xf32> to vector<4x16x1xf32>
    %66 = vector.broadcast %65 : vector<4x16x1xf32> to vector<4x16x16xf32>
    %67 = arith.subf %63, %66 : vector<4x16x16xf32>
    %68 = math.exp %67 : vector<4x16x16xf32>
    %cst_21 = arith.constant dense<0.000000e+00> : vector<4x16xf32>
    %69 = vector.multi_reduction <add>, %68, %cst_21 [2] : vector<4x16x16xf32> to vector<4x16xf32>
    %70 = vector.shape_cast %69 : vector<4x16xf32> to vector<4x16x1xf32>
    %71 = tpu.reciprocal %70 {approx = true} : vector<4x16x1xf32> -> vector<4x16x1xf32>
    %72 = vector.broadcast %71 : vector<4x16x1xf32> to vector<4x16x16xf32>
    %73 = arith.mulf %68, %72 : vector<4x16x16xf32>
    %74 = arith.truncf %73 : vector<4x16x16xf32> to vector<4x16x16xbf16>
    "tpu.trace_start"() <{level = 10 : i32, message = "tnm,tmd->tnd"}> : () -> ()
    %cst_22 = arith.constant dense<0.000000e+00> : vector<4x16x8xf32>
    %75 = tpu.matmul %74, %62, %cst_22 {dimension_numbers = #tpu.dot_dimension_numbers<[2], [1], [1], [2], [0, 0, 0, 1, 1, 2], [0], [0]>} : vector<4x16x16xbf16>, vector<4x16x8xbf16>, vector<4x16x8xf32> -> vector<4x16x8xf32>
    "tpu.trace_stop"() : () -> ()
    %76 = tpu.concatenate %27, %43, %59, %75 in 2 : vector<4x16x8xf32>, vector<4x16x8xf32>, vector<4x16x8xf32>, vector<4x16x8xf32> -> vector<4x16x32xf32>
    %77 = vector.shape_cast %76 : vector<4x16x32xf32> to vector<64x32xf32>
    %78 = arith.truncf %77 : vector<64x32xf32> to vector<64x32xbf16>
    %c0_23 = arith.constant 0 : index
    %c0_24 = arith.constant 0 : index
    %79 = vector.load %arg4[%c0_23, %c0_24] : memref<32x32xbf16, #tpu.memory_space<vmem>>, vector<32x32xbf16>
    %cst_25 = arith.constant dense<0.000000e+00> : vector<64x32xf32>
    %80 = tpu.matmul %78, %79, %cst_25 {dimension_numbers = #tpu.dot_dimension_numbers<[1], [0], [0], [1], [0, 0, 1, 1], [], []>} : vector<64x32xbf16>, vector<32x32xbf16>, vector<64x32xf32> -> vector<64x32xf32>
    %c0_26 = arith.constant 0 : index
    %c0_27 = arith.constant 0 : index
    %81 = vector.load %arg5[%c0_26, %c0_27] : memref<1x32xf32, #tpu.memory_space<vmem>>, vector<1x32xf32>
    %82 = vector.broadcast %81 : vector<1x32xf32> to vector<64x32xf32>
    %83 = arith.addf %80, %82 : vector<64x32xf32>
    %cst_28 = arith.constant 0.000000e+00 : f32
    %84 = vector.broadcast %cst_28 : f32 to vector<64x32xf32>
    %85 = arith.maximumf %83, %84 : vector<64x32xf32>
    %86 = arith.truncf %85 : vector<64x32xf32> to vector<64x32xbf16>
    %c0_29 = arith.constant 0 : index
    %c0_30 = arith.constant 0 : index
    %87 = vector.load %arg6[%c0_29, %c0_30] : memref<32x32xbf16, #tpu.memory_space<vmem>>, vector<32x32xbf16>
    %cst_31 = arith.constant dense<0.000000e+00> : vector<64x32xf32>
    %88 = tpu.matmul %86, %87, %cst_31 {dimension_numbers = #tpu.dot_dimension_numbers<[1], [0], [0], [1], [0, 0, 1, 1], [], []>} : vector<64x32xbf16>, vector<32x32xbf16>, vector<64x32xf32> -> vector<64x32xf32>
    %c0_32 = arith.constant 0 : index
    %c0_33 = arith.constant 0 : index
    %89 = vector.load %arg7[%c0_32, %c0_33] : memref<1x32xf32, #tpu.memory_space<vmem>>, vector<1x32xf32>
    %90 = vector.broadcast %89 : vector<1x32xf32> to vector<64x32xf32>
    %91 = arith.addf %88, %90 : vector<64x32xf32>
    %c0_34 = arith.constant 0 : index
    %c0_35 = arith.constant 0 : index
    %c0_36 = arith.constant 0 : index
    %92 = vector.load %arg8[%c0_34, %c0_35, %c0_36] : memref<1x64x32xf32, #tpu.memory_space<vmem>>, vector<1x64x32xf32>
    %93 = vector.shape_cast %92 : vector<1x64x32xf32> to vector<64x32xf32>
    %94 = vector.shape_cast %91 : vector<64x32xf32> to vector<1x64x32xf32>
    tpu.vector_store %arg8[%c0_34, %c0_35, %c0_36], %94 {strides = array<i32>} : memref<1x64x32xf32, #tpu.memory_space<vmem>>, vector<1x64x32xf32>,
    return
  }
  func.func @transform_0(%arg0: i32) -> (i32, i32, i32) {
    %c0_i32 = arith.constant 0 : i32
    %c0_i32_0 = arith.constant 0 : i32
    %c0_i32_1 = arith.constant 0 : i32
    return %arg0, %c0_i32, %c0_i32_0 : i32, i32, i32
  }
  func.func @transform_1(%arg0: i32) -> (i32, i32) {
    %c0_i32 = arith.constant 0 : i32
    %c0_i32_0 = arith.constant 0 : i32
    %c0_i32_1 = arith.constant 0 : i32
    return %c0_i32, %c0_i32_0 : i32, i32
  }
  func.func @transform_2(%arg0: i32) -> (i32, i32) {
    %c0_i32 = arith.constant 0 : i32
    %c0_i32_0 = arith.constant 0 : i32
    %c0_i32_1 = arith.constant 0 : i32
    return %c0_i32, %c0_i32_0 : i32, i32
  }
  func.func @transform_3(%arg0: i32) -> (i32, i32) {
    %c0_i32 = arith.constant 0 : i32
    %c0_i32_0 = arith.constant 0 : i32
    %c0_i32_1 = arith.constant 0 : i32
    return %c0_i32, %c0_i32_0 : i32, i32
  }
  func.func @transform_4(%arg0: i32) -> (i32, i32) {
    %c0_i32 = arith.constant 0 : i32
    %c0_i32_0 = arith.constant 0 : i32
    %c0_i32_1 = arith.constant 0 : i32
    return %c0_i32, %c0_i32_0 : i32, i32
  }
  func.func @transform_5(%arg0: i32) -> (i32, i32) {
    %c0_i32 = arith.constant 0 : i32
    %c0_i32_0 = arith.constant 0 : i32
    %c0_i32_1 = arith.constant 0 : i32
    return %c0_i32, %c0_i32_0 : i32, i32
  }
  func.func @transform_6(%arg0: i32) -> (i32, i32) {
    %c0_i32 = arith.constant 0 : i32
    %c0_i32_0 = arith.constant 0 : i32
    %c0_i32_1 = arith.constant 0 : i32
    return %c0_i32, %c0_i32_0 : i32, i32
  }
  func.func @transform_7(%arg0: i32) -> (i32, i32, i32) {
    %c0_i32 = arith.constant 0 : i32
    %c0_i32_0 = arith.constant 0 : i32
    %c0_i32_1 = arith.constant 0 : i32
    return %arg0, %c0_i32, %c0_i32_0 : i32, i32, i32
  }
}

</mosaic_0001>

<bundles_post_ra>
// kernel: tpu_custom_call.1
= control target key start
LH: loop header
LB: loop body
LE: loop exit
PB: predicated region body
PF: predicated region fallthrough
CT: control target
= control target key end

     0   :  { %s3397_s24 = smov 0   ;;  %s3896_s0 = inlined_call_operand.vmem [shape: f32[2,64,32], index: 0, kind: input, shape index: {}]   ;;  %s3897_s1 = inlined_call_operand.vmem [shape: bf16[32,96], index: 1, kind: input, shape index: {}]   ;;  %s3898_s2 = inlined_call_operand.vmem [shape: f32[1,96], index: 2, kind: input, shape index: {}]   ;;  %s3899_s3 = inlined_call_operand.vmem [shape: bf16[32,32], index: 3, kind: input, shape index: {}]   ;;  %s3900_s4 = inlined_call_operand.vmem [shape: f32[1,32], index: 4, kind: input, shape index: {}]   ;;  %s3901_s5 = inlined_call_operand.vmem [shape: bf16[32,32], index: 5, kind: input, shape index: {}]   ;;  %s3902_s6 = inlined_call_operand.vmem [shape: f32[1,32], index: 6, kind: input, shape index: {}]   ;;  %s3903_s7 = inlined_call_operand.vmem [shape: f32[2,64,32], index: 7, kind: output, shape index: {}]  }
   0x1 LB: > { %s2739_s25 = sadd.s32 4294967295, %s3339_s24   ;;  %p2743_p0 = scmp.ge.s32.totalorder %s3339_s24, 1  ;;  %s3339_s24 = sphi %s3397_s24, %s17_s24  }
   0x2   : > { %p237_p1 = scmp.lt.s32.totalorder %s3339_s24, 3 }
   0x4   : > { %p238_p2 = pnand %p2743_p0, %p237_p1 }
   0x5   : > { %v3199_v0 = vld [vmem:[%s3897_s1] sm:$0xff] (!%p238_p2)   ;;  %p269_p3 = scmp.lt.s32.totalorder (!%p238_p2), %s2739_s25, 1  ;;  %v3200_v1 = vld [vmem:[%s3897_s1 + $0x8] sm:$0xff] (!%p238_p2)   ;;  %vm315_vm0 = vcmask (!%p238_p2), 261120   ;;  %v3341_v14 = vmov (!%p238_p2), 0.0   ;;  %vm3342_vm1 = vmmov (!%p238_p2), 0  }
   0x6   : > { %241 = sbr.rel (%p238_p2) target bundleno = 3337 (0xd09), region = 48  ;;  %2887 = vmatprep.subr.bf16.mxu0 (!%p238_p2), %v3199_v0  ;;  %2899 = vmatprep.subr.bf16.mxu1 (!%p238_p2), %v3341_v14  ;;  %v2748_v15 = vld [vmem:[%s3898_s2] ss:$0 sm:$0xff] (!%p238_p2)  ;;  %s3343_s13 = smov (!%p238_p2), 96   ;;  %vm408_vm2 = vcmask (!%p238_p2), 64512   ;;  %vm606_vm3 = vcmask (!%p238_p2), 130048  }
   0x7   : > { %2888 = vmatpush3.bf16.msra.mxu0 (!%p238_p2), %v3199_v0  ;;  %2901 = vmatprep.mubr.msk.bf16.mxu1 (!%p238_p2), %vm3342_vm1, %v3341_v14  ;;  %s3344_s14 = smov (!%p238_p2), 64   ;;  %s3345_s15 = smov (!%p238_p2), 88   ;;  %vm2451_vm4 = vcmask (!%p238_p2), 195584  }
   0x8   : > { %2889 = vmatprep.subr.bf16.mxu0 (!%p238_p2), %v3200_v1  ;;  %s3346_s16 = smov (!%p238_p2), 120   ;;  %s3347_s17 = smov (!%p238_p2), 56  }
   0x9   : > { %s3348_s18 = smov (!%p238_p2), 80   ;;  %s3349_s19 = smov (!%p238_p2), 112  }
   0xa   : > { %s3350_s20 = smov (!%p238_p2), 48   ;;  %s3351_s21 = smov (!%p238_p2), 72  }
   0xb   : > { %2890 = vmatpush3.bf16.msra.mxu0 (!%p238_p2), %v3200_v1  ;;  %s3352_s22 = smov (!%p238_p2), 104   ;;  %s3353_s23 = smov (!%p238_p2), 40  }
   0xc   : > { %2911 = vmatprep.subr.bf16.mxu0 (!%p238_p2), %v3341_v14  ;;  %s3354_s26 = smov (!%p238_p2), 8   ;;  %s3355_s27 = smov (!%p238_p2), 16  }
   0xd   : > { %s3905_s25 = smov (!%p269_p3, %s2739_s25), 1 }
   0xe   : > { %s2803_s30 = sshll.u32 %s3905_s25, 6 }
   0xf   : > { %s273_s10 = scalar_lea.vmem %s3896_s0, %s2803_s30 }
  0x10   : > { %v280_v2 = vld [vmem:[%s273_s10] sm:$0xff]  ;;  %v281_v3 = vld [vmem:[%s273_s10 + $0x8] sm:$0xff]  ;;  %v282_v4 = vld [vmem:[%s273_s10 + $0x10] sm:$0xff] }
  0x11   : > { %v288_v5 = vpack.c.bf16 %v281_v3, %v280_v2  ;;  %v283_v6 = vld [vmem:[%s273_s10 + $0x18] sm:$0xff]  ;;  %v284_v7 = vld [vmem:[%s273_s10 + $0x20] sm:$0xff]  ;;  %v285_v8 = vld [vmem:[%s273_s10 + $0x28] sm:$0xff] }
  0x12   : > { %v289_v9 = vpack.c.bf16 %v283_v6, %v282_v4  ;;  %v290_v10 = vpack.c.bf16 %v285_v8, %v284_v7  ;;  %v286_v11 = vld [vmem:[%s273_s10 + $0x30] sm:$0xff]  ;;  %v287_v12 = vld [vmem:[%s273_s10 + $0x38] sm:$0xff]  ;;  %s3356_s10 = smov 24  }
  0x13   : > { %2891 = vmatprep.mubr.msk.bf16.mxu0 %vm315_vm0, %v288_v5  ;;  %v291_v13 = vpack.c.bf16 %v287_v12, %v286_v11 }
  0x14   : > { %2892 = vmatmul.mubr.msk.bf16.vlgmr.msra.gmra.mrb[0].mxu0 %vm315_vm0, %v289_v9 }
  0x15   : > { %2895 = vmatprep.mubr.msk.bf16.mxu0 %vm315_vm0, %v290_v10 }
  0x1c   : > { %2896 = vmatmul.mubr.msk.bf16.gmra.mrb[4].mxu0 %vm315_vm0, %v291_v13 }
  0x1d   : > { %2913 = vmatprep.mubr.msk.bf16.mxu0 %vm3342_vm1, %v3341_v14 }
  0xe7   : > { %v2893_v16 = vpop.f32.mrb[0].mxu0 }
  0xe8   : > { %v371_v17 = vadd.f32 %v2893_v16, %v2748_v15  ;;  %v362_v18 = vpop.f32.mrb[1].mxu0 }
  0xe9   : > { %v363_v19 = vadd.f32 %v2748_v15, %v362_v18  ;;  %v2894_v20 = vpop.f32.mrb[2].mxu0 }
  0xea   : > { %v374_v21 = vadd.f32 %v2894_v20, %v2748_v15  ;;  %v365_v22 = vpop.f32.mrb[3].mxu0  ;;  %v395_v24 = vmax.f32 %v371_v17, 0.0 }
  0xeb   : > { %v366_v23 = vadd.f32 %v2748_v15, %v365_v22  ;;  %v393_v26 = vmax.f32 %v363_v19, 0.0 }
  0xec   : > { %v396_v25 = vmax.f32 %v374_v21, 0.0 }
  0xed   : > { %v394_v27 = vmax.f32 %v366_v23, 0.0 }
  0xee   : > { %v3432_v28 = vpack.c.bf16 %v396_v25, %v395_v24 }
  0xef   : > { %v3434_v29 = vpack.c.bf16 %v394_v27, %v393_v26  ;;  %v2897_v30 = vpop.f32.mrb[4].mxu0 }
  0xf0   : > { %v387_v31 = vadd.f32 %v2897_v30, %v2748_v15  ;;  %v378_v32 = vpop.f32.mrb[5].mxu0 }
  0xf1   : > { %v379_v33 = vadd.f32 %v2748_v15, %v378_v32  ;;  %v2898_v34 = vpop.f32.mrb[6].mxu0  ;;  %406 = vrot.lane.b32.xlu0 %v3434_v29, %s3343_s13 }
  0xf2   : > { %v399_v35 = vmax.f32 %v387_v31, 0.0  ;;  %v390_v36 = vadd.f32 %v2898_v34, %v2748_v15  ;;  %v381_v37 = vpop.f32.mrb[7].mxu0 }
  0xf3   : > { %v397_v38 = vmax.f32 %v379_v33, 0.0  ;;  %v382_v39 = vadd.f32 %v2748_v15, %v381_v37 }
  0xf4   : > { %v400_v40 = vmax.f32 %v390_v36, 0.0 }
  0xf5   : > { %v398_v41 = vmax.f32 %v382_v39, 0.0  ;;  %457 = vrot.lane.b32.xlu0 %v3432_v28, %s3343_s13 }
  0xf6   : > { %v3438_v42 = vpack.c.bf16 %v400_v40, %v399_v35 }
  0xf7   : > { %v3440_v43 = vpack.c.bf16 %v398_v41, %v397_v38 }
  0xf9   : > { %507 = vrot.lane.b32.xlu1 %v3440_v43, %s3343_s13 }
  0xfd   : > { %557 = vrot.lane.b32.xlu1 %v3438_v42, %s3343_s13 }
 0x163   : > { %v407_v44 = vpop.permute.xlu0 %406 }
 0x164   : > { %v413_v45 = vsel %vm408_vm2, %v407_v44, 0 }
 0x165   : > { %2900 = vmatpush3.bf16.xpose.msra.mxu1 %v413_v45 }
 0x166   : > { %2905 = vmatprep.subr.bf16.mxu1 %v3341_v14 }
 0x167   : > { %v458_v46 = vpop.permute.xlu0 %457 }
 0x168   : > { %v463_v48 = vsel %vm408_vm2, %v458_v46, 0 }
 0x16b   : > { %v508_v47 = vpop.permute.xlu1 %507 }
 0x16c   : > { %v513_v49 = vsel %vm408_vm2, %v508_v47, 0  ;;  %2902 = vmatmul.mubr.msk.bf16.vlgmr.msra.gmra.mrb[0].mxu1 %vm408_vm2, %v3434_v29 }
 0x16d   : > { %2906 = vmatpush3.bf16.xpose.msra.mxu1 %v463_v48  ;;  %2912 = vmatpush3.bf16.xpose.msra.mxu0 %v513_v49 }
 0x16e   : > { %2907 = vmatprep.mubr.msk.bf16.mxu1 %vm3342_vm1, %v3341_v14  ;;  %2917 = vmatprep.subr.bf16.mxu1 %v3341_v14 }
 0x16f   : > { %2923 = vmatprep.subr.bf16.mxu0 %v3341_v14  ;;  %v558_v50 = vpop.permute.xlu1 %557 }
 0x170   : > { %v563_v51 = vsel %vm408_vm2, %v558_v50, 0 }
 0x174   : > { %2908 = vmatmul.mubr.msk.bf16.vlgmr.msra.gmra.mrb[4].mxu1 %vm408_vm2, %v3432_v28  ;;  %2914 = vmatmul.mubr.msk.bf16.vlgmr.msra.gmra.mrb[8].mxu0 %vm408_vm2, %v3440_v43 }
 0x175   : > { %2918 = vmatpush3.bf16.xpose.msra.mxu1 %v563_v51  ;;  %2919 = vmatprep.mubr.msk.bf16.mxu1 %vm3342_vm1, %v3341_v14 }
 0x176   : > { %2929 = vmatprep.subr.bf16.mxu1 %v3341_v14  ;;  %2925 = vmatprep.mubr.msk.bf16.mxu0 %vm3342_vm1, %v3341_v14 }
 0x17c   : > { %2920 = vmatmul.mubr.msk.bf16.vlgmr.msra.gmra.mrb[8].mxu1 %vm408_vm2, %v3438_v42 }
 0x17d   : > { %2931 = vmatprep.mubr.msk.bf16.mxu1 %vm3342_vm1, %v3341_v14 }
 0x23f   : > { %v449_v52 = vpop.f32.mrb[0].mxu1 }
 0x240   : > { %v2903_v53 = vpop.f32.mrb[1].mxu1  ;;  %v607_v54 = vsel %vm606_vm3, %v449_v52, -inf }
 0x241   : > { %608 = vmax.xlane.f32.xlu0 %v607_v54  ;;  %v452_v55 = vpop.f32.mrb[2].mxu1 }
 0x242   : > { %v2904_v56 = vpop.f32.mrb[3].mxu1  ;;  %v610_v57 = vsel %vm606_vm3, %v452_v55, -inf }
 0x243   : > { %611 = vmax.xlane.f32.xlu1 %v610_v57 }
 0x247   : > { %v499_v58 = vpop.f32.mrb[4].mxu1  ;;  %v549_v59 = vpop.f32.mrb[8].mxu0 }
 0x248   : > { %v2909_v60 = vpop.f32.mrb[5].mxu1  ;;  %v2915_v61 = vpop.f32.mrb[9].mxu0  ;;  %v619_v62 = vsel %vm606_vm3, %v549_v59, -inf  ;;  %v613_v63 = vsel %vm606_vm3, %v499_v58, -inf }
 0x249   : > { %v552_v0 = vpop.f32.mrb[10].mxu0  ;;  %620 = vmax.xlane.f32.xlu1 %v619_v62  ;;  %614 = vmax.xlane.f32.xlu0 %v613_v63  ;;  %v502_v1 = vpop.f32.mrb[6].mxu1 }
 0x24a   : > { %v2910_v2 = vpop.f32.mrb[7].mxu1  ;;  %v2916_v3 = vpop.f32.mrb[11].mxu0  ;;  %v616_v4 = vsel %vm606_vm3, %v502_v1, -inf  ;;  %v622_v7 = vsel %vm606_vm3, %v552_v0, -inf }
 0x24d   : > { %617 = vmax.xlane.f32.xlu0 %v616_v4 }
 0x24f   : > { %v599_v5 = vpop.f32.mrb[8].mxu1 }
 0x250   : > { %v2921_v6 = vpop.f32.mrb[9].mxu1  ;;  %v625_v8 = vsel %vm606_vm3, %v599_v5, -inf }
 0x251   : > { %623 = vmax.xlane.f32.xlu0 %v622_v7  ;;  %626 = vmax.xlane.f32.xlu1 %v625_v8  ;;  %v602_v9 = vpop.f32.mrb[10].mxu1 }
 0x252   : > { %v2922_v10 = vpop.f32.mrb[11].mxu1  ;;  %v628_v11 = vsel %vm606_vm3, %v602_v9, -inf }
 0x255   : > { %629 = vmax.xlane.f32.xlu0 %v628_v11 }
 0x262   : > { %699 = vrot.lane.b32.xlu1 %v3434_v29, %s3344_s14 }
 0x266   : > { %793 = vrot.lane.b32.xlu1 %v3440_v43, %s3344_s14 }
 0x26a   : > { %840 = vrot.lane.b32.xlu1 %v3438_v42, %s3344_s14 }
 0x26b   : > { %746 = vrot.lane.b32.xlu0 %v3432_v28, %s3344_s14 }
 0x2ce   : > { %v609_v12 = vpop.xlane.xlu0 %608 }
 0x2cf   : > { %v631_v13 = vsub.f32 %v449_v52, %v609_v12 }
 0x2d0   : > { %v612_v15 = vpop.xlane.xlu1 %611 }
 0x2d1   : > { %v639_v16 = vmul.f32 1.442695, %v631_v13  ;;  %v632_v17 = vsub.f32 %v452_v55, %v612_v15 }
 0x2d3   : > { %3205 = vpow2.f32 %v639_v16  ;;  %v641_v18 = vmul.f32 1.442695, %v632_v17 }
 0x2d5   : > { %3207 = vpow2.f32 %v641_v18 }
 0x2d6   : > { %v621_v19 = vpop.xlane.xlu1 %620  ;;  %v615_v20 = vpop.xlane.xlu0 %614 }
 0x2d7   : > { %v635_v21 = vsub.f32 %v549_v59, %v621_v19  ;;  %v633_v22 = vsub.f32 %v499_v58, %v615_v20 }
 0x2d9   : > { %v643_v23 = vmul.f32 1.442695, %v633_v22  ;;  %v647_v24 = vmul.f32 1.442695, %v635_v21 }
 0x2da   : > { %v618_v25 = vpop.xlane.xlu0 %617 }
 0x2db   : > { %v634_v26 = vsub.f32 %v502_v1, %v618_v25  ;;  %3209 = vpow2.f32 %v643_v23 }
 0x2dc   : > { %3211 = vpow2.f32 %v647_v24 }
 0x2dd   : > { %v3480_v27 = vpop.eup %3205  ;;  %v645_v30 = vmul.f32 1.442695, %v634_v26 }
 0x2de   : > { %v627_v31 = vpop.xlane.xlu1 %626  ;;  %v624_v32 = vpop.xlane.xlu0 %623  ;;  %v655_v33 = vsel %vm606_vm3, %v3480_v27, 0.0 }
 0x2df   : > { %v3484_v34 = vpop.eup %3207  ;;  %3213 = vpow2.f32 %v645_v30  ;;  %v637_v35 = vsub.f32 %v599_v5, %v627_v31  ;;  %v636_v36 = vsub.f32 %v552_v0, %v624_v32  ;;  %656 = vadd.xlane.f32.xlu1 %v655_v33 }
 0x2e0   : > { %v658_v37 = vsel %vm606_vm3, %v3484_v34, 0.0 }
 0x2e1   : > { %v651_v38 = vmul.f32 1.442695, %v637_v35  ;;  %v649_v39 = vmul.f32 1.442695, %v636_v36  ;;  %659 = vadd.xlane.f32.xlu0 %v658_v37 }
 0x2e2   : > { %v700_v40 = vpop.permute.xlu1 %699  ;;  %v630_v41 = vpop.xlane.xlu0 %629 }
 0x2e3   : > { %3215 = vpow2.f32 %v651_v38  ;;  %v638_v44 = vsub.f32 %v602_v9, %v630_v41  ;;  %2924 = vmatpush3.bf16.msra.mxu0 %v700_v40 }
 0x2e4   : > { %3217 = vpow2.f32 %v649_v39  ;;  %2935 = vmatprep.subr.bf16.mxu0 %v3341_v14 }
 0x2e5   : > { %v653_v45 = vmul.f32 1.442695, %v638_v44  ;;  %v3210_v46 = vpop.eup %3209 }
 0x2e6   : > { %v747_v47 = vpop.permute.xlu0 %746  ;;  %v661_v48 = vsel %vm606_vm3, %v3210_v46, 0.0  ;;  %v3490_v49 = vpop.eup %3211 }
 0x2e7   : > { %3219 = vpow2.f32 %v653_v45  ;;  %2930 = vmatpush3.bf16.msra.mxu1 %v747_v47  ;;  %662 = vadd.xlane.f32.xlu1 %v661_v48  ;;  %v667_v52 = vsel %vm606_vm3, %v3490_v49, 0.0  ;;  %v794_v59 = vpop.permute.xlu1 %793 }
 0x2e8   : > { %2941 = vmatprep.subr.bf16.mxu1 %v3341_v14 }
 0x2e9   : > { %v3214_v50 = vpop.eup %3213 }
 0x2ea   : > { %v664_v51 = vsel %vm606_vm3, %v3214_v50, 0.0 }
 0x2eb   : > { %665 = vadd.xlane.f32.xlu0 %v664_v51  ;;  %668 = vadd.xlane.f32.xlu1 %v667_v52  ;;  %v841_v60 = vpop.permute.xlu1 %840 }
 0x2ed   : > { %v3496_v53 = vpop.eup %3215 }
 0x2ee   : > { %v3218_v54 = vpop.eup %3217  ;;  %v673_v55 = vsel %vm606_vm3, %v3496_v53, 0.0 }
 0x2ef   : > { %v670_v56 = vsel %vm606_vm3, %v3218_v54, 0.0  ;;  %674 = vadd.xlane.f32.xlu1 %v673_v55 }
 0x2f0   : > { %671 = vadd.xlane.f32.xlu0 %v670_v56 }
 0x2f1   : > { %v3220_v57 = vpop.eup %3219 }
 0x2f2   : > { %v676_v58 = vsel %vm606_vm3, %v3220_v57, 0.0 }
 0x2f4   : > { %677 = vadd.xlane.f32.xlu0 %v676_v58 }
 0x300   : > { %940 = vrot.lane.b32.xlu1 %v3432_v28, %s3345_s15 }
 0x304   : > { %991 = vrot.lane.b32.xlu1 %v3440_v43, %s3345_s15 }
 0x308   : > { %1042 = vrot.lane.b32.xlu1 %v3438_v42, %s3345_s15 }
 0x30a   : > { %889 = vrot.lane.b32.xlu0 %v3434_v29, %s3345_s15 }
 0x30c   : > { %1040 = vrot.lane.b32.xlu1 %v3438_v42, %s3346_s16 }
 0x30e   : > { %887 = vrot.lane.b32.xlu0 %v3434_v29, %s3346_s16 }
 0x312   : > { %938 = vrot.lane.b32.xlu0 %v3432_v28, %s3346_s16 }
 0x316   : > { %989 = vrot.lane.b32.xlu0 %v3440_v43, %s3346_s16 }
 0x36c   : > { %v657_v61 = vpop.xlane.xlu1 %656 }
 0x36d   : > { %3221 = vrcp.f32 %v657_v61 }
 0x36e   : > { %v660_v62 = vpop.xlane.xlu0 %659 }
 0x36f   : > { %3223 = vrcp.f32 %v660_v62 }
 0x374   : > { %v663_v63 = vpop.xlane.xlu1 %662 }
 0x375   : > { %3225 = vrcp.f32 %v663_v63 }
 0x377   : > { %v3222_v0 = vpop.eup %3221 }
 0x378   : > { %v666_v1 = vpop.xlane.xlu0 %665  ;;  %v669_v3 = vpop.xlane.xlu1 %668  ;;  %v687_v4 = vmul.f32 %v3222_v0, %v3480_v27 }
 0x379   : > { %v3224_v2 = vpop.eup %3223  ;;  %3227 = vrcp.f32 %v666_v1 }
 0x37a   : > { %v688_v5 = vmul.f32 %v3224_v2, %v3484_v34  ;;  %3229 = vrcp.f32 %v669_v3 }
 0x37c   : > { %v695_v6 = vpack.c.bf16 %v688_v5, %v687_v4  ;;  %v675_v7 = vpop.xlane.xlu1 %674 }
 0x37d   : > { %v672_v8 = vpop.xlane.xlu0 %671 }
 0x37e   : > { %2926 = vmatmul.mubr.msk.bf16.vlgmr.msra.gmra.mrb[12].mxu0 %vm606_vm3, %v695_v6  ;;  %3231 = vrcp.f32 %v672_v8 }
 0x37f   : > { %2936 = vmatpush3.bf16.msra.mxu0 %v794_v59  ;;  %2937 = vmatprep.mubr.msk.bf16.mxu0 %vm3342_vm1, %v3341_v14  ;;  %3233 = vrcp.f32 %v675_v7  ;;  %v3226_v9 = vpop.eup %3225 }
 0x380   : > { %2947 = vmatprep.subr.bf16.mxu0 %v3341_v14  ;;  %v689_v12 = vmul.f32 %v3226_v9, %v3210_v46  ;;  %v941_v21 = vpop.permute.xlu1 %940 }
 0x381   : > { %v678_v10 = vpop.xlane.xlu0 %677  ;;  %v946_v32 = vsel %vm408_vm2, %v941_v21, 0 }
 0x382   : > { %3235 = vrcp.f32 %v678_v10 }
 0x383   : > { %v3228_v11 = vpop.eup %3227 }
 0x384   : > { %v690_v13 = vmul.f32 %v3228_v11, %v3214_v50  ;;  %v3230_v16 = vpop.eup %3229  ;;  %v992_v31 = vpop.permute.xlu1 %991 }
 0x385   : > { %v691_v19 = vmul.f32 %v3230_v16, %v3490_v49  ;;  %v890_v22 = vpop.permute.xlu0 %889  ;;  %v997_v34 = vsel %vm408_vm2, %v992_v31, 0 }
 0x386   : > { %v696_v15 = vpack.c.bf16 %v690_v13, %v689_v12  ;;  %v895_v27 = vsel %vm408_vm2, %v890_v22, 0 }
 0x388   : > { %2932 = vmatmul.mubr.msk.bf16.vlgmr.msra.gmra.mrb[12].mxu1 %vm606_vm3, %v696_v15  ;;  %v3232_v17 = vpop.eup %3231  ;;  %v1043_v35 = vpop.permute.xlu1 %1042 }
 0x389   : > { %2942 = vmatpush3.bf16.msra.mxu1 %v841_v60  ;;  %2943 = vmatprep.mubr.msk.bf16.mxu1 %vm3342_vm1, %v3341_v14  ;;  %v3234_v18 = vpop.eup %3233  ;;  %v692_v20 = vmul.f32 %v3232_v17, %v3218_v54  ;;  %v888_v33 = vpop.permute.xlu0 %887  ;;  %v1048_v37 = vsel %vm408_vm2, %v1043_v35, 0 }
 0x38a   : > { %2953 = vmatprep.subr.bf16.mxu1 %v3341_v14  ;;  %v693_v25 = vmul.f32 %v3234_v18, %v3496_v53 }
 0x38b   : > { %v697_v24 = vpack.c.bf16 %v692_v20, %v691_v19 }
 0x38c   : > { %v3236_v23 = vpop.eup %3235  ;;  %v1041_v39 = vpop.permute.xlu1 %1040 }
 0x38d   : > { %v694_v26 = vmul.f32 %v3236_v23, %v3220_v57  ;;  %2938 = vmatmul.mubr.msk.bf16.vlgmr.msra.gmra.mrb[16].mxu0 %vm606_vm3, %v697_v24  ;;  %v939_v36 = vpop.permute.xlu0 %938 }
 0x38e   : > { %2948 = vmatpush3.bf16.xpose.msra.mxu0 %v895_v27  ;;  %2949 = vmatprep.mubr.msk.bf16.mxu0 %vm3342_vm1, %v3341_v14 }
 0x38f   : > { %v698_v30 = vpack.c.bf16 %v694_v26, %v693_v25  ;;  %2959 = vmatprep.subr.bf16.mxu0 %v3341_v14 }
 0x391   : > { %2944 = vmatmul.mubr.msk.bf16.vlgmr.msra.gmra.mrb[16].mxu1 %vm606_vm3, %v698_v30  ;;  %v990_v38 = vpop.permute.xlu0 %989 }
 0x392   : > { %2954 = vmatpush3.bf16.xpose.msra.mxu1 %v946_v32  ;;  %2955 = vmatprep.mubr.msk.bf16.mxu1 %vm3342_vm1, %v3341_v14 }
 0x393   : > { %2965 = vmatprep.subr.bf16.mxu1 %v3341_v14 }
 0x395   : > { %2950 = vmatmul.mubr.msk.bf16.vlgmr.msra.gmra.mrb[20].mxu0 %vm408_vm2, %v888_v33 }
 0x396   : > { %2960 = vmatpush3.bf16.xpose.msra.mxu0 %v997_v34  ;;  %2961 = vmatprep.mubr.msk.bf16.mxu0 %vm3342_vm1, %v3341_v14 }
 0x397   : > { %2971 = vmatprep.subr.bf16.mxu0 %v3341_v14 }
 0x399   : > { %2956 = vmatmul.mubr.msk.bf16.vlgmr.msra.gmra.mrb[20].mxu1 %vm408_vm2, %v939_v36 }
 0x39a   : > { %2966 = vmatpush3.bf16.xpose.msra.mxu1 %v1048_v37  ;;  %2967 = vmatprep.mubr.msk.bf16.mxu1 %vm3342_vm1, %v3341_v14 }
 0x39b   : > { %2977 = vmatprep.subr.bf16.mxu1 %v3341_v14 }
 0x39d   : > { %2962 = vmatmul.mubr.msk.bf16.vlgmr.msra.gmra.mrb[24].mxu0 %vm408_vm2, %v990_v38 }
 0x39e   : > { %2973 = vmatprep.mubr.msk.bf16.mxu0 %vm3342_vm1, %v3341_v14 }
 0x3a1   : > { %2968 = vmatmul.mubr.msk.bf16.vlgmr.msra.gmra.mrb[24].mxu1 %vm408_vm2, %v1041_v39 }
 0x3a2   : > { %2979 = vmatprep.mubr.msk.bf16.mxu1 %vm3342_vm1, %v3341_v14 }
 0x451   : > { %v3548_v40 = vpop.f32.mrb[12].mxu0 }
 0x452   : > { %v2927_v41 = vpop.f32.mrb[13].mxu0 }
 0x453   : > { %v3550_v44 = vpop.f32.mrb[14].mxu0 }
 0x454   : > { %v2928_v45 = vpop.f32.mrb[15].mxu0 }
 0x45b   : > { %v3552_v46 = vpop.f32.mrb[12].mxu1 }
 0x45c   : > { %v2933_v47 = vpop.f32.mrb[13].mxu1 }
 0x45d   : > { %v3554_v48 = vpop.f32.mrb[14].mxu1 }
 0x45e   : > { %v2934_v49 = vpop.f32.mrb[15].mxu1 }
 0x460   : > { %v3556_v50 = vpop.f32.mrb[16].mxu0 }
 0x461   : > { %v2939_v51 = vpop.f32.mrb[17].mxu0 }
 0x462   : > { %v3558_v52 = vpop.f32.mrb[18].mxu0 }
 0x463   : > { %v2940_v53 = vpop.f32.mrb[19].mxu0 }
 0x464   : > { %v3560_v54 = vpop.f32.mrb[16].mxu1 }
 0x465   : > { %v2945_v55 = vpop.f32.mrb[17].mxu1 }
 0x466   : > { %v3562_v56 = vpop.f32.mrb[18].mxu1 }
 0x467   : > { %v2946_v57 = vpop.f32.mrb[19].mxu1 }
 0x468   : > { %v931_v58 = vpop.f32.mrb[20].mxu0 }
 0x469   : > { %v2951_v59 = vpop.f32.mrb[21].mxu0  ;;  %v1091_v60 = vsel %vm606_vm3, %v931_v58, -inf }
 0x46a   : > { %1092 = vmax.xlane.f32.xlu0 %v1091_v60  ;;  %v934_v61 = vpop.f32.mrb[22].mxu0 }
 0x46b   : > { %v2952_v62 = vpop.f32.mrb[23].mxu0  ;;  %v1094_v63 = vsel %vm606_vm3, %v934_v61, -inf }
 0x46c   : > { %v982_v0 = vpop.f32.mrb[20].mxu1  ;;  %1095 = vmax.xlane.f32.xlu1 %v1094_v63 }
 0x46d   : > { %v2957_v1 = vpop.f32.mrb[21].mxu1  ;;  %v1097_v2 = vsel %vm606_vm3, %v982_v0, -inf }
 0x46e   : > { %v985_v3 = vpop.f32.mrb[22].mxu1  ;;  %1098 = vmax.xlane.f32.xlu0 %v1097_v2 }
 0x46f   : > { %v2958_v4 = vpop.f32.mrb[23].mxu1  ;;  %v1100_v7 = vsel %vm606_vm3, %v985_v3, -inf }
 0x470   : > { %v1033_v5 = vpop.f32.mrb[24].mxu0 }
 0x471   : > { %v2963_v6 = vpop.f32.mrb[25].mxu0  ;;  %v1103_v8 = vsel %vm606_vm3, %v1033_v5, -inf }
 0x472   : > { %1101 = vmax.xlane.f32.xlu0 %v1100_v7  ;;  %1104 = vmax.xlane.f32.xlu1 %v1103_v8  ;;  %v1036_v9 = vpop.f32.mrb[26].mxu0 }
 0x473   : > { %v2964_v10 = vpop.f32.mrb[27].mxu0  ;;  %v1106_v16 = vsel %vm606_vm3, %v1036_v9, -inf }
 0x474   : > { %v1084_v11 = vpop.f32.mrb[24].mxu1 }
 0x475   : > { %v2969_v12 = vpop.f32.mrb[25].mxu1  ;;  %v1109_v13 = vsel %vm606_vm3, %v1084_v11, -inf }
 0x476   : > { %v1087_v15 = vpop.f32.mrb[26].mxu1  ;;  %1110 = vmax.xlane.f32.xlu1 %v1109_v13  ;;  %1107 = vmax.xlane.f32.xlu0 %v1106_v16 }
 0x477   : > { %v2970_v17 = vpop.f32.mrb[27].mxu1  ;;  %v1112_v18 = vsel %vm606_vm3, %v1087_v15, -inf }
 0x47a   : > { %1113 = vmax.xlane.f32.xlu0 %v1112_v18 }
 0x487   : > { %1183 = vrot.lane.b32.xlu1 %v3434_v29, %s3347_s17 }
 0x48b   : > { %1277 = vrot.lane.b32.xlu1 %v3440_v43, %s3347_s17 }
 0x48f   : > { %1324 = vrot.lane.b32.xlu1 %v3438_v42, %s3347_s17 }
 0x490   : > { %1230 = vrot.lane.b32.xlu0 %v3432_v28, %s3347_s17 }
 0x4f7   : > { %v1093_v19 = vpop.xlane.xlu0 %1092 }
 0x4f8   : > { %v1115_v20 = vsub.f32 %v931_v58, %v1093_v19 }
 0x4f9   : > { %v1096_v21 = vpop.xlane.xlu1 %1095 }
 0x4fa   : > { %v1123_v22 = vmul.f32 1.442695, %v1115_v20  ;;  %v1116_v23 = vsub.f32 %v934_v61, %v1096_v21 }
 0x4fb   : > { %v1099_v24 = vpop.xlane.xlu0 %1098 }
 0x4fc   : > { %3237 = vpow2.f32 %v1123_v22  ;;  %v1125_v25 = vmul.f32 1.442695, %v1116_v23  ;;  %v1117_v26 = vsub.f32 %v982_v0, %v1099_v24 }
 0x4fe   : > { %3239 = vpow2.f32 %v1125_v25  ;;  %v1127_v27 = vmul.f32 1.442695, %v1117_v26 }
 0x4ff   : > { %v1105_v30 = vpop.xlane.xlu1 %1104  ;;  %v1102_v31 = vpop.xlane.xlu0 %1101 }
 0x500   : > { %3241 = vpow2.f32 %v1127_v27  ;;  %v1119_v32 = vsub.f32 %v1033_v5, %v1105_v30  ;;  %v1118_v33 = vsub.f32 %v985_v3, %v1102_v31 }
 0x502   : > { %v1131_v34 = vmul.f32 1.442695, %v1119_v32  ;;  %v1129_v35 = vmul.f32 1.442695, %v1118_v33 }
 0x503   : > { %v1111_v36 = vpop.xlane.xlu1 %1110  ;;  %v1108_v37 = vpop.xlane.xlu0 %1107 }
 0x504   : > { %3243 = vpow2.f32 %v1131_v34  ;;  %v1121_v38 = vsub.f32 %v1084_v11, %v1111_v36  ;;  %v1120_v39 = vsub.f32 %v1036_v9, %v1108_v37 }
 0x505   : > { %3245 = vpow2.f32 %v1129_v35 }
 0x506   : > { %v3576_v41 = vpop.eup %3237  ;;  %v1135_v45 = vmul.f32 1.442695, %v1121_v38  ;;  %v1133_v47 = vmul.f32 1.442695, %v1120_v39 }
 0x507   : > { %v1184_v49 = vpop.permute.xlu1 %1183  ;;  %v1114_v51 = vpop.xlane.xlu0 %1113  ;;  %v1139_v53 = vsel %vm606_vm3, %v3576_v41, 0.0 }
 0x508   : > { %v3240_v55 = vpop.eup %3239  ;;  %3247 = vpow2.f32 %v1135_v45  ;;  %v1122_v57 = vsub.f32 %v1087_v15, %v1114_v51  ;;  %2972 = vmatpush3.bf16.msra.mxu0 %v1184_v49  ;;  %1140 = vadd.xlane.f32.xlu1 %v1139_v53 }
 0x509   : > { %3249 = vpow2.f32 %v1133_v47  ;;  %v1142_v58 = vsel %vm606_vm3, %v3240_v55, 0.0  ;;  %2983 = vmatprep.subr.bf16.mxu0 %v3341_v14 }
 0x50a   : > { %v3582_v59 = vpop.eup %3241  ;;  %v1137_v60 = vmul.f32 1.442695, %v1122_v57  ;;  %1143 = vadd.xlane.f32.xlu0 %v1142_v58 }
 0x50b   : > { %v1231_v61 = vpop.permute.xlu0 %1230  ;;  %v1145_v62 = vsel %vm606_vm3, %v3582_v59, 0.0  ;;  %v1278_v9 = vpop.permute.xlu1 %1277 }
 0x50c   : > { %3251 = vpow2.f32 %v1137_v60  ;;  %1146 = vadd.xlane.f32.xlu1 %v1145_v62  ;;  %2978 = vmatpush3.bf16.msra.mxu1 %v1231_v61 }
 0x50d   : > { %2989 = vmatprep.subr.bf16.mxu1 %v3341_v14 }
 0x50e   : > { %v3244_v63 = vpop.eup %3243 }
 0x50f   : > { %v3246_v0 = vpop.eup %3245  ;;  %v1151_v1 = vsel %vm606_vm3, %v3244_v63, 0.0  ;;  %v1325_v10 = vpop.permute.xlu1 %1324 }
 0x510   : > { %1152 = vadd.xlane.f32.xlu1 %v1151_v1  ;;  %v1148_v2 = vsel %vm606_vm3, %v3246_v0, 0.0 }
 0x511   : > { %1149 = vadd.xlane.f32.xlu0 %v1148_v2 }
 0x512   : > { %v3589_v3 = vpop.eup %3247 }
 0x513   : > { %v3250_v4 = vpop.eup %3249  ;;  %v1157_v5 = vsel %vm606_vm3, %v3589_v3, 0.0 }
 0x514   : > { %1158 = vadd.xlane.f32.xlu1 %v1157_v5  ;;  %v1154_v6 = vsel %vm606_vm3, %v3250_v4, 0.0 }
 0x515   : > { %1155 = vadd.xlane.f32.xlu0 %v1154_v6 }
 0x516   : > { %v3252_v7 = vpop.eup %3251 }
 0x517   : > { %v1160_v8 = vsel %vm606_vm3, %v3252_v7, 0.0 }
 0x519   : > { %1161 = vadd.xlane.f32.xlu0 %v1160_v8 }
 0x525   : > { %1424 = vrot.lane.b32.xlu1 %v3432_v28, %s3348_s18 }
 0x529   : > { %1475 = vrot.lane.b32.xlu1 %v3440_v43, %s3348_s18 }
 0x52d   : > { %1526 = vrot.lane.b32.xlu1 %v3438_v42, %s3348_s18 }
 0x52f   : > { %1373 = vrot.lane.b32.xlu0 %v3434_v29, %s3348_s18 }
 0x531   : > { %1524 = vrot.lane.b32.xlu1 %v3438_v42, %s3349_s19 }
 0x533   : > { %1371 = vrot.lane.b32.xlu0 %v3434_v29, %s3349_s19 }
 0x537   : > { %1422 = vrot.lane.b32.xlu0 %v3432_v28, %s3349_s19 }
 0x53b   : > { %1473 = vrot.lane.b32.xlu0 %v3440_v43, %s3349_s19 }
 0x595   : > { %v1141_v11 = vpop.xlane.xlu1 %1140 }
 0x596   : > { %3253 = vrcp.f32 %v1141_v11 }
 0x597   : > { %v1144_v12 = vpop.xlane.xlu0 %1143 }
 0x598   : > { %3255 = vrcp.f32 %v1144_v12 }
 0x599   : > { %v1147_v13 = vpop.xlane.xlu1 %1146 }
 0x59a   : > { %3257 = vrcp.f32 %v1147_v13 }
 0x59d   : > { %v1153_v15 = vpop.xlane.xlu1 %1152 }
 0x59e   : > { %v1150_v16 = vpop.xlane.xlu0 %1149 }
 0x59f   : > { %3259 = vrcp.f32 %v1150_v16 }
 0x5a0   : > { %v3254_v17 = vpop.eup %3253  ;;  %3261 = vrcp.f32 %v1153_v15 }
 0x5a1   : > { %v1159_v19 = vpop.xlane.xlu1 %1158  ;;  %v1171_v21 = vmul.f32 %v3254_v17, %v3576_v41 }
 0x5a2   : > { %v3256_v18 = vpop.eup %3255  ;;  %v1156_v20 = vpop.xlane.xlu0 %1155 }
 0x5a3   : > { %v1172_v22 = vmul.f32 %v3256_v18, %v3240_v55  ;;  %3263 = vrcp.f32 %v1156_v20 }
 0x5a4   : > { %3265 = vrcp.f32 %v1159_v19  ;;  %v3258_v25 = vpop.eup %3257 }
 0x5a5   : > { %v1179_v23 = vpack.c.bf16 %v1172_v22, %v1171_v21  ;;  %v1173_v27 = vmul.f32 %v3258_v25, %v3582_v59  ;;  %v1425_v38 = vpop.permute.xlu1 %1424 }
 0x5a6   : > { %v1162_v24 = vpop.xlane.xlu0 %1161  ;;  %v1430_v57 = vsel %vm408_vm2, %v1425_v38, 0 }
 0x5a7   : > { %3267 = vrcp.f32 %v1162_v24  ;;  %2974 = vmatmul.mubr.msk.bf16.vlgmr.msra.gmra.mrb[28].mxu0 %vm606_vm3, %v1179_v23 }
 0x5a8   : > { %2984 = vmatpush3.bf16.msra.mxu0 %v1278_v9  ;;  %2985 = vmatprep.mubr.msk.bf16.mxu0 %vm3342_vm1, %v3341_v14 }
 0x5a9   : > { %v3260_v26 = vpop.eup %3259  ;;  %2995 = vmatprep.subr.bf16.mxu0 %v3341_v14  ;;  %v1476_v55 = vpop.permute.xlu1 %1475 }
 0x5aa   : > { %v1174_v30 = vmul.f32 %v3260_v26, %v3246_v0  ;;  %v3262_v31 = vpop.eup %3261  ;;  %v1374_v37 = vpop.permute.xlu0 %1373  ;;  %v1481_v58 = vsel %vm408_vm2, %v1476_v55, 0 }
 0x5ab   : > { %v1175_v34 = vmul.f32 %v3262_v31, %v3244_v63  ;;  %v1379_v49 = vsel %vm408_vm2, %v1374_v37, 0 }
 0x5ac   : > { %v1180_v32 = vpack.c.bf16 %v1174_v30, %v1173_v27 }
 0x5ad   : > { %v3264_v33 = vpop.eup %3263  ;;  %v1527_v60 = vpop.permute.xlu1 %1526 }
 0x5ae   : > { %v1176_v35 = vmul.f32 %v3264_v33, %v3250_v4  ;;  %2980 = vmatmul.mubr.msk.bf16.vlgmr.msra.gmra.mrb[28].mxu1 %vm606_vm3, %v1180_v32  ;;  %v3266_v36 = vpop.eup %3265  ;;  %v1372_v53 = vpop.permute.xlu0 %1371  ;;  %v1532_v61 = vsel %vm408_vm2, %v1527_v60, 0 }
 0x5af   : > { %2990 = vmatpush3.bf16.msra.mxu1 %v1325_v10  ;;  %2991 = vmatprep.mubr.msk.bf16.mxu1 %vm3342_vm1, %v3341_v14  ;;  %v1177_v45 = vmul.f32 %v3266_v36, %v3589_v3 }
 0x5b0   : > { %v1181_v39 = vpack.c.bf16 %v1176_v35, %v1175_v34  ;;  %3001 = vmatprep.subr.bf16.mxu1 %v3341_v14 }
 0x5b1   : > { %v3268_v41 = vpop.eup %3267  ;;  %v1525_v63 = vpop.permute.xlu1 %1524 }
 0x5b2   : > { %v1178_v47 = vmul.f32 %v3268_v41, %v3252_v7  ;;  %2986 = vmatmul.mubr.msk.bf16.vlgmr.msra.gmra.mrb[32].mxu0 %vm606_vm3, %v1181_v39  ;;  %v1423_v59 = vpop.permute.xlu0 %1422 }
 0x5b3   : > { %2996 = vmatpush3.bf16.xpose.msra.mxu0 %v1379_v49  ;;  %2997 = vmatprep.mubr.msk.bf16.mxu0 %vm3342_vm1, %v3341_v14 }
 0x5b4   : > { %v1182_v51 = vpack.c.bf16 %v1178_v47, %v1177_v45  ;;  %3007 = vmatprep.subr.bf16.mxu0 %v3341_v14 }
 0x5b6   : > { %2992 = vmatmul.mubr.msk.bf16.vlgmr.msra.gmra.mrb[32].mxu1 %vm606_vm3, %v1182_v51  ;;  %v1474_v62 = vpop.permute.xlu0 %1473 }
 0x5b7   : > { %3003 = vmatprep.mubr.msk.bf16.mxu1 %vm3342_vm1, %v3341_v14 }
 0x5b8   : > { %3002 = vmatpush3.bf16.xpose.msra.mxu1 %v1430_v57 }
 0x5b9   : > { %3013 = vmatprep.subr.bf16.mxu1 %v3341_v14 }
 0x5ba   : > { %2998 = vmatmul.mubr.msk.bf16.vlgmr.msra.gmra.mrb[36].mxu0 %vm408_vm2, %v1372_v53 }
 0x5bb   : > { %3008 = vmatpush3.bf16.xpose.msra.mxu0 %v1481_v58  ;;  %3009 = vmatprep.mubr.msk.bf16.mxu0 %vm3342_vm1, %v3341_v14 }
 0x5bc   : > { %3019 = vmatprep.subr.bf16.mxu0 %v3341_v14 }
 0x5bf   : > { %3004 = vmatmul.mubr.msk.bf16.vlgmr.msra.gmra.mrb[36].mxu1 %vm408_vm2, %v1423_v59 }
 0x5c0   : > { %3014 = vmatpush3.bf16.xpose.msra.mxu1 %v1532_v61  ;;  %3015 = vmatprep.mubr.msk.bf16.mxu1 %vm3342_vm1, %v3341_v14 }
 0x5c1   : > { %3025 = vmatprep.subr.bf16.mxu1 %v3341_v14 }
 0x5c2   : > { %3010 = vmatmul.mubr.msk.bf16.vlgmr.msra.gmra.mrb[40].mxu0 %vm408_vm2, %v1474_v62 }
 0x5c3   : > { %3021 = vmatprep.mubr.msk.bf16.mxu0 %vm3342_vm1, %v3341_v14 }
 0x5c7   : > { %3016 = vmatmul.mubr.msk.bf16.vlgmr.msra.gmra.mrb[40].mxu1 %vm408_vm2, %v1525_v63 }
 0x5c8   : > { %3027 = vmatprep.mubr.msk.bf16.mxu1 %vm3342_vm1, %v3341_v14 }
 0x67a   : > { %v3640_v0 = vpop.f32.mrb[28].mxu0 }
 0x67b   : > { %v2975_v1 = vpop.f32.mrb[29].mxu0 }
 0x67c   : > { %v3642_v2 = vpop.f32.mrb[30].mxu0 }
 0x67d   : > { %v3139_v3 = vpack.i.bf16 %v3642_v2, %v3640_v0  ;;  %v2976_v4 = vpop.f32.mrb[31].mxu0 }
 0x681   : > { %v3646_v5 = vpop.f32.mrb[28].mxu1 }
 0x682   : > { %v2981_v6 = vpop.f32.mrb[29].mxu1 }
 0x683   : > { %v3648_v7 = vpop.f32.mrb[30].mxu1 }
 0x684   : > { %v3144_v8 = vpack.i.bf16 %v3648_v7, %v3646_v5  ;;  %v2982_v9 = vpop.f32.mrb[31].mxu1 }
 0x685   : > { %v3652_v10 = vpop.f32.mrb[32].mxu0 }
 0x686   : > { %v2987_v11 = vpop.f32.mrb[33].mxu0 }
 0x687   : > { %v3654_v12 = vpop.f32.mrb[34].mxu0 }
 0x688   : > { %v3159_v13 = vpack.i.bf16 %v3654_v12, %v3652_v10  ;;  %v2988_v15 = vpop.f32.mrb[35].mxu0 }
 0x689   : > { %v3658_v16 = vpop.f32.mrb[32].mxu1 }
 0x68a   : > { %v2993_v17 = vpop.f32.mrb[33].mxu1 }
 0x68b   : > { %v3660_v18 = vpop.f32.mrb[34].mxu1 }
 0x68c   : > { %v3164_v19 = vpack.i.bf16 %v3660_v18, %v3658_v16  ;;  %v2994_v20 = vpop.f32.mrb[35].mxu1 }
 0x68d   : > { %v1415_v21 = vpop.f32.mrb[36].mxu0 }
 0x68e   : > { %v2999_v22 = vpop.f32.mrb[37].mxu0  ;;  %v1575_v23 = vsel %vm606_vm3, %v1415_v21, -inf }
 0x68f   : > { %1576 = vmax.xlane.f32.xlu0 %v1575_v23  ;;  %v1418_v24 = vpop.f32.mrb[38].mxu0 }
 0x690   : > { %v3000_v25 = vpop.f32.mrb[39].mxu0  ;;  %v1578_v26 = vsel %vm606_vm3, %v1418_v24, -inf }
 0x691   : > { %1579 = vmax.xlane.f32.xlu1 %v1578_v26 }
 0x692   : > { %v1466_v27 = vpop.f32.mrb[36].mxu1 }
 0x693   : > { %v3005_v30 = vpop.f32.mrb[37].mxu1  ;;  %v1581_v31 = vsel %vm606_vm3, %v1466_v27, -inf }
 0x694   : > { %1582 = vmax.xlane.f32.xlu0 %v1581_v31  ;;  %v1469_v32 = vpop.f32.mrb[38].mxu1 }
 0x695   : > { %v3006_v33 = vpop.f32.mrb[39].mxu1  ;;  %v1517_v34 = vpop.f32.mrb[40].mxu0  ;;  %v1584_v37 = vsel %vm606_vm3, %v1469_v32, -inf }
 0x696   : > { %v3011_v35 = vpop.f32.mrb[41].mxu0  ;;  %v1587_v36 = vsel %vm606_vm3, %v1517_v34, -inf }
 0x697   : > { %1588 = vmax.xlane.f32.xlu1 %v1587_v36  ;;  %v1520_v38 = vpop.f32.mrb[42].mxu0 }
 0x698   : > { %1585 = vmax.xlane.f32.xlu0 %v1584_v37  ;;  %v3012_v39 = vpop.f32.mrb[43].mxu0  ;;  %v1590_v49 = vsel %vm606_vm3, %v1520_v38, -inf }
 0x69a   : > { %v1568_v41 = vpop.f32.mrb[40].mxu1 }
 0x69b   : > { %v3017_v45 = vpop.f32.mrb[41].mxu1  ;;  %v1593_v47 = vsel %vm606_vm3, %v1568_v41, -inf }
 0x69c   : > { %v1571_v51 = vpop.f32.mrb[42].mxu1  ;;  %1594 = vmax.xlane.f32.xlu1 %v1593_v47  ;;  %1591 = vmax.xlane.f32.xlu0 %v1590_v49 }
 0x69d   : > { %v3018_v53 = vpop.f32.mrb[43].mxu1  ;;  %v1596_v55 = vsel %vm606_vm3, %v1571_v51, -inf }
 0x6a0   : > { %1597 = vmax.xlane.f32.xlu0 %v1596_v55 }
 0x6ad   : > { %1667 = vrot.lane.b32.xlu1 %v3434_v29, %s3350_s20 }
 0x6b1   : > { %1761 = vrot.lane.b32.xlu1 %v3440_v43, %s3350_s20 }
 0x6b5   : > { %1808 = vrot.lane.b32.xlu1 %v3438_v42, %s3350_s20 }
 0x6b6   : > { %1714 = vrot.lane.b32.xlu0 %v3432_v28, %s3350_s20 }
 0x71c   : > { %v1577_v57 = vpop.xlane.xlu0 %1576 }
 0x71d   : > { %v1599_v58 = vsub.f32 %v1415_v21, %v1577_v57 }
 0x71e   : > { %v1580_v59 = vpop.xlane.xlu1 %1579 }
 0x71f   : > { %v1607_v60 = vmul.f32 1.442695, %v1599_v58  ;;  %v1600_v61 = vsub.f32 %v1418_v24, %v1580_v59 }
 0x721   : > { %3269 = vpow2.f32 %v1607_v60  ;;  %v1609_v62 = vmul.f32 1.442695, %v1600_v61  ;;  %v1583_v63 = vpop.xlane.xlu0 %1582 }
 0x722   : > { %v1601_v1 = vsub.f32 %v1466_v27, %v1583_v63 }
 0x723   : > { %3271 = vpow2.f32 %v1609_v62 }
 0x724   : > { %v1611_v4 = vmul.f32 1.442695, %v1601_v1  ;;  %v1589_v6 = vpop.xlane.xlu1 %1588 }
 0x725   : > { %v1603_v9 = vsub.f32 %v1517_v34, %v1589_v6  ;;  %v1586_v11 = vpop.xlane.xlu0 %1585 }
 0x726   : > { %3273 = vpow2.f32 %v1611_v4  ;;  %v1602_v15 = vsub.f32 %v1469_v32, %v1586_v11 }
 0x727   : > { %v1615_v17 = vmul.f32 1.442695, %v1603_v9 }
 0x728   : > { %v1613_v20 = vmul.f32 1.442695, %v1602_v15 }
 0x729   : > { %3275 = vpow2.f32 %v1615_v17  ;;  %v1595_v22 = vpop.xlane.xlu1 %1594  ;;  %v1592_v23 = vpop.xlane.xlu0 %1591 }
 0x72a   : > { %3277 = vpow2.f32 %v1613_v20  ;;  %v1605_v21 = vsub.f32 %v1568_v41, %v1595_v22  ;;  %v1604_v25 = vsub.f32 %v1520_v38, %v1592_v23 }
 0x72b   : > { %v3270_v24 = vpop.eup %3269 }
 0x72c   : > { %v1619_v26 = vmul.f32 1.442695, %v1605_v21  ;;  %v1617_v30 = vmul.f32 1.442695, %v1604_v25  ;;  %v1623_v27 = vsel %vm606_vm3, %v3270_v24, 0.0 }
 0x72d   : > { %v3272_v31 = vpop.eup %3271  ;;  %v1668_v33 = vpop.permute.xlu1 %1667  ;;  %1624 = vadd.xlane.f32.xlu1 %v1623_v27 }
 0x72e   : > { %v1598_v35 = vpop.xlane.xlu0 %1597  ;;  %3279 = vpow2.f32 %v1619_v26  ;;  %3020 = vmatpush3.bf16.msra.mxu0 %v1668_v33  ;;  %v1626_v32 = vsel %vm606_vm3, %v3272_v31, 0.0 }
 0x72f   : > { %v1606_v34 = vsub.f32 %v1571_v51, %v1598_v35  ;;  %3281 = vpow2.f32 %v1617_v30  ;;  %1627 = vadd.xlane.f32.xlu0 %v1626_v32  ;;  %3031 = vmatprep.subr.bf16.mxu0 %v3341_v14 }
 0x730   : > { %v3274_v36 = vpop.eup %3273 }
 0x731   : > { %v1621_v37 = vmul.f32 1.442695, %v1606_v34  ;;  %v1629_v39 = vsel %vm606_vm3, %v3274_v36, 0.0  ;;  %v1762_v60 = vpop.permute.xlu1 %1761 }
 0x732   : > { %v1715_v38 = vpop.permute.xlu0 %1714  ;;  %1630 = vadd.xlane.f32.xlu1 %v1629_v39 }
 0x733   : > { %3283 = vpow2.f32 %v1621_v37  ;;  %3026 = vmatpush3.bf16.msra.mxu1 %v1715_v38  ;;  %v3276_v41 = vpop.eup %3275 }
 0x734   : > { %3037 = vmatprep.subr.bf16.mxu1 %v3341_v14  ;;  %v3278_v45 = vpop.eup %3277  ;;  %v1635_v47 = vsel %vm606_vm3, %v3276_v41, 0.0 }
 0x735   : > { %v1632_v49 = vsel %vm606_vm3, %v3278_v45, 0.0  ;;  %v1809_v61 = vpop.permute.xlu1 %1808 }
 0x736   : > { %1636 = vadd.xlane.f32.xlu1 %v1635_v47  ;;  %1633 = vadd.xlane.f32.xlu0 %v1632_v49 }
 0x738   : > { %v3683_v51 = vpop.eup %3279 }
 0x739   : > { %v3282_v53 = vpop.eup %3281  ;;  %v1641_v55 = vsel %vm606_vm3, %v3683_v51, 0.0 }
 0x73a   : > { %1642 = vadd.xlane.f32.xlu1 %v1641_v55  ;;  %v1638_v57 = vsel %vm606_vm3, %v3282_v53, 0.0 }
 0x73b   : > { %1639 = vadd.xlane.f32.xlu0 %v1638_v57 }
 0x73d   : > { %v3284_v58 = vpop.eup %3283 }
 0x73e   : > { %v1644_v59 = vsel %vm606_vm3, %v3284_v58, 0.0 }
 0x73f   : > { %1645 = vadd.xlane.f32.xlu0 %v1644_v59 }
 0x74b   : > { %1908 = vrot.lane.b32.xlu1 %v3432_v28, %s3351_s21 }
 0x74f   : > { %1959 = vrot.lane.b32.xlu1 %v3440_v43, %s3351_s21 }
 0x753   : > { %2010 = vrot.lane.b32.xlu1 %v3438_v42, %s3351_s21 }
 0x755   : > { %1857 = vrot.lane.b32.xlu0 %v3434_v29, %s3351_s21  ;;  %s278_s21 = scalar_lea.vmem %s3903_s7, %s2803_s30 }
 0x757   : > { %2008 = vrot.lane.b32.xlu1 %v3438_v42, %s3352_s22 }
 0x759   : > { %1855 = vrot.lane.b32.xlu0 %v3434_v29, %s3352_s22 }
 0x75d   : > { %1906 = vrot.lane.b32.xlu0 %v3432_v28, %s3352_s22 }
 0x761   : > { %1957 = vrot.lane.b32.xlu0 %v3440_v43, %s3352_s22 }
 0x7ba   : > { %v1625_v62 = vpop.xlane.xlu1 %1624 }
 0x7bb   : > { %3285 = vrcp.f32 %v1625_v62 }
 0x7bc   : > { %v1628_v63 = vpop.xlane.xlu0 %1627 }
 0x7bd   : > { %3287 = vrcp.f32 %v1628_v63 }
 0x7bf   : > { %v1631_v1 = vpop.xlane.xlu1 %1630 }
 0x7c0   : > { %3289 = vrcp.f32 %v1631_v1 }
 0x7c3   : > { %v1637_v4 = vpop.xlane.xlu1 %1636  ;;  %v1634_v6 = vpop.xlane.xlu0 %1633 }
 0x7c4   : > { %3291 = vrcp.f32 %v1634_v6 }
 0x7c5   : > { %v3286_v9 = vpop.eup %3285  ;;  %3293 = vrcp.f32 %v1637_v4 }
 0x7c6   : > { %v1655_v15 = vmul.f32 %v3286_v9, %v3270_v24 }
 0x7c7   : > { %v3288_v11 = vpop.eup %3287  ;;  %v1643_v20 = vpop.xlane.xlu1 %1642 }
 0x7c8   : > { %v1656_v17 = vmul.f32 %v3288_v11, %v3272_v31  ;;  %v1640_v22 = vpop.xlane.xlu0 %1639 }
 0x7c9   : > { %3295 = vrcp.f32 %v1640_v22 }
 0x7ca   : > { %v1663_v23 = vpack.c.bf16 %v1656_v17, %v1655_v15  ;;  %3297 = vrcp.f32 %v1643_v20  ;;  %v3290_v25 = vpop.eup %3289 }
 0x7cb   : > { %v1657_v30 = vmul.f32 %v3290_v25, %v3274_v36  ;;  %v1909_v38 = vpop.permute.xlu1 %1908 }
 0x7cc   : > { %v1646_v21 = vpop.xlane.xlu0 %1645  ;;  %3022 = vmatmul.mubr.msk.bf16.vlgmr.msra.gmra.mrb[44].mxu0 %vm606_vm3, %v1663_v23  ;;  %v1914_v57 = vsel %vm408_vm2, %v1909_v38, 0 }
 0x7cd   : > { %3299 = vrcp.f32 %v1646_v21  ;;  %3032 = vmatpush3.bf16.msra.mxu0 %v1762_v60  ;;  %3033 = vmatprep.mubr.msk.bf16.mxu0 %vm3342_vm1, %v3341_v14 }
 0x7ce   : > { %3043 = vmatprep.subr.bf16.mxu0 %v3341_v14  ;;  %v3292_v26 = vpop.eup %3291 }
 0x7cf   : > { %v1658_v24 = vmul.f32 %v3292_v26, %v3278_v45  ;;  %v3294_v27 = vpop.eup %3293  ;;  %v1960_v55 = vpop.permute.xlu1 %1959 }
 0x7d0   : > { %v1659_v35 = vmul.f32 %v3294_v27, %v3276_v41  ;;  %v1858_v37 = vpop.permute.xlu0 %1857 }
 0x7d1   : > { %v1664_v31 = vpack.c.bf16 %v1658_v24, %v1657_v30  ;;  %v1863_v49 = vsel %vm408_vm2, %v1858_v37, 0 }
 0x7d3   : > { %v3296_v33 = vpop.eup %3295  ;;  %3028 = vmatmul.mubr.msk.bf16.vlgmr.msra.gmra.mrb[44].mxu1 %vm606_vm3, %v1664_v31  ;;  %v2011_v59 = vpop.permute.xlu1 %2010 }
 0x7d4   : > { %v1660_v34 = vmul.f32 %v3296_v33, %v3282_v53  ;;  %v3298_v32 = vpop.eup %3297  ;;  %3038 = vmatpush3.bf16.msra.mxu1 %v1809_v61  ;;  %3039 = vmatprep.mubr.msk.bf16.mxu1 %vm3342_vm1, %v3341_v14  ;;  %v1856_v53 = vpop.permute.xlu0 %1855  ;;  %v2016_v60 = vsel %vm408_vm2, %v2011_v59, 0 }
 0x7d5   : > { %3049 = vmatprep.subr.bf16.mxu1 %v3341_v14  ;;  %v1661_v36 = vmul.f32 %v3298_v32, %v3683_v51  ;;  %v1965_v51 = vsel %vm408_vm2, %v1960_v55, 0 }
 0x7d6   : > { %v1665_v39 = vpack.c.bf16 %v1660_v34, %v1659_v35 }
 0x7d7   : > { %v3300_v47 = vpop.eup %3299  ;;  %v2009_v62 = vpop.permute.xlu1 %2008 }
 0x7d8   : > { %v1662_v45 = vmul.f32 %v3300_v47, %v3284_v58  ;;  %3034 = vmatmul.mubr.msk.bf16.vlgmr.msra.gmra.mrb[48].mxu0 %vm606_vm3, %v1665_v39  ;;  %v1907_v58 = vpop.permute.xlu0 %1906 }
 0x7d9   : > { %3044 = vmatpush3.bf16.xpose.msra.mxu0 %v1863_v49  ;;  %3045 = vmatprep.mubr.msk.bf16.mxu0 %vm3342_vm1, %v3341_v14 }
 0x7da   : > { %v1666_v41 = vpack.c.bf16 %v1662_v45, %v1661_v36  ;;  %3055 = vmatprep.subr.bf16.mxu0 %v3341_v14 }
 0x7dc   : > { %3040 = vmatmul.mubr.msk.bf16.vlgmr.msra.gmra.mrb[48].mxu1 %vm606_vm3, %v1666_v41  ;;  %v1958_v61 = vpop.permute.xlu0 %1957 }
 0x7dd   : > { %3051 = vmatprep.mubr.msk.bf16.mxu1 %vm3342_vm1, %v3341_v14  ;;  %3050 = vmatpush3.bf16.xpose.msra.mxu1 %v1914_v57 }
 0x7de   : > { %3061 = vmatprep.subr.bf16.mxu1 %v3341_v14 }
 0x7e0   : > { %3046 = vmatmul.mubr.msk.bf16.vlgmr.msra.gmra.mrb[52].mxu0 %vm408_vm2, %v1856_v53 }
 0x7e1   : > { %3056 = vmatpush3.bf16.xpose.msra.mxu0 %v1965_v51  ;;  %3057 = vmatprep.mubr.msk.bf16.mxu0 %vm3342_vm1, %v3341_v14 }
 0x7e2   : > { %3067 = vmatprep.subr.bf16.mxu0 %v3341_v14 }
 0x7e4   : > { %3052 = vmatmul.mubr.msk.bf16.vlgmr.msra.gmra.mrb[52].mxu1 %vm408_vm2, %v1907_v58 }
 0x7e5   : > { %3062 = vmatpush3.bf16.xpose.msra.mxu1 %v2016_v60  ;;  %3063 = vmatprep.mubr.msk.bf16.mxu1 %vm3342_vm1, %v3341_v14 }
 0x7e6   : > { %3073 = vmatprep.subr.bf16.mxu1 %v3341_v14 }
 0x7e8   : > { %3058 = vmatmul.mubr.msk.bf16.vlgmr.msra.gmra.mrb[56].mxu0 %vm408_vm2, %v1958_v61 }
 0x7e9   : > { %3069 = vmatprep.mubr.msk.bf16.mxu0 %vm3342_vm1, %v3341_v14 }
 0x7ec   : > { %3064 = vmatmul.mubr.msk.bf16.vlgmr.msra.gmra.mrb[56].mxu1 %vm408_vm2, %v2009_v62 }
 0x7ed   : > { %3075 = vmatprep.mubr.msk.bf16.mxu1 %vm3342_vm1, %v3341_v14 }
 0x89f   : > { %v3732_v63 = vpop.f32.mrb[44].mxu0 }
 0x8a0   : > { %v3023_v1 = vpop.f32.mrb[45].mxu0 }
 0x8a1   : > { %v3734_v4 = vpop.f32.mrb[46].mxu0 }
 0x8a2   : > { %v3149_v6 = vpack.i.bf16 %v3734_v4, %v3732_v63  ;;  %v3024_v9 = vpop.f32.mrb[47].mxu0 }
 0x8a6   : > { %v3738_v11 = vpop.f32.mrb[44].mxu1 }
 0x8a7   : > { %v3029_v15 = vpop.f32.mrb[45].mxu1 }
 0x8a8   : > { %v3740_v17 = vpop.f32.mrb[46].mxu1 }
 0x8a9   : > { %v3154_v20 = vpack.i.bf16 %v3740_v17, %v3738_v11  ;;  %v3030_v22 = vpop.f32.mrb[47].mxu1 }
 0x8ab   : > { %v3744_v23 = vpop.f32.mrb[48].mxu0 }
 0x8ac   : > { %v3035_v21 = vpop.f32.mrb[49].mxu0 }
 0x8ad   : > { %v3746_v25 = vpop.f32.mrb[50].mxu0 }
 0x8ae   : > { %v3174_v26 = vpack.i.bf16 %v3746_v25, %v3744_v23  ;;  %v3036_v30 = vpop.f32.mrb[51].mxu0 }
 0x8af   : > { %v3750_v24 = vpop.f32.mrb[48].mxu1 }
 0x8b0   : > { %v3041_v27 = vpop.f32.mrb[49].mxu1 }
 0x8b1   : > { %v3752_v31 = vpop.f32.mrb[50].mxu1 }
 0x8b2   : > { %v3184_v33 = vpack.i.bf16 %v3752_v31, %v3750_v24  ;;  %v3042_v35 = vpop.f32.mrb[51].mxu1 }
 0x8b3   : > { %v1899_v34 = vpop.f32.mrb[52].mxu0 }
 0x8b4   : > { %v3047_v32 = vpop.f32.mrb[53].mxu0  ;;  %v2059_v37 = vsel %vm606_vm3, %v1899_v34, -inf }
 0x8b5   : > { %2060 = vmax.xlane.f32.xlu0 %v2059_v37  ;;  %v1902_v38 = vpop.f32.mrb[54].mxu0 }
 0x8b6   : > { %v3048_v39 = vpop.f32.mrb[55].mxu0  ;;  %v2062_v47 = vsel %vm606_vm3, %v1902_v38, -inf }
 0x8b7   : > { %2063 = vmax.xlane.f32.xlu1 %v2062_v47  ;;  %v1950_v36 = vpop.f32.mrb[52].mxu1 }
 0x8b8   : > { %v3053_v45 = vpop.f32.mrb[53].mxu1  ;;  %v2065_v49 = vsel %vm606_vm3, %v1950_v36, -inf }
 0x8b9   : > { %2066 = vmax.xlane.f32.xlu0 %v2065_v49  ;;  %v1953_v41 = vpop.f32.mrb[54].mxu1 }
 0x8ba   : > { %v3054_v53 = vpop.f32.mrb[55].mxu1  ;;  %v2068_v58 = vsel %vm606_vm3, %v1953_v41, -inf }
 0x8bb   : > { %v2001_v55 = vpop.f32.mrb[56].mxu0 }
 0x8bc   : > { %v3059_v57 = vpop.f32.mrb[57].mxu0  ;;  %v2071_v51 = vsel %vm606_vm3, %v2001_v55, -inf }
 0x8bd   : > { %2072 = vmax.xlane.f32.xlu1 %v2071_v51  ;;  %v2004_v59 = vpop.f32.mrb[58].mxu0  ;;  %2069 = vmax.xlane.f32.xlu0 %v2068_v58 }
 0x8be   : > { %v3060_v60 = vpop.f32.mrb[59].mxu0  ;;  %v2074_v9 = vsel %vm606_vm3, %v2004_v59, -inf }
 0x8bf   : > { %v2052_v61 = vpop.f32.mrb[56].mxu1 }
 0x8c0   : > { %v3065_v62 = vpop.f32.mrb[57].mxu1  ;;  %v2077_v1 = vsel %vm606_vm3, %v2052_v61, -inf }
 0x8c1   : > { %v2055_v15 = vpop.f32.mrb[58].mxu1  ;;  %2078 = vmax.xlane.f32.xlu1 %v2077_v1  ;;  %2075 = vmax.xlane.f32.xlu0 %v2074_v9 }
 0x8c2   : > { %v3066_v22 = vpop.f32.mrb[59].mxu1  ;;  %v2080_v21 = vsel %vm606_vm3, %v2055_v15, -inf }
 0x8c5   : > { %2081 = vmax.xlane.f32.xlu0 %v2080_v21 }
 0x8d2   : > { %2151 = vrot.lane.b32.xlu1 %v3434_v29, %s3353_s23 }
 0x942   : > { %v2061_v30 = vpop.xlane.xlu0 %2060 }
 0x943   : > { %v2083_v27 = vsub.f32 %v1899_v34, %v2061_v30 }
 0x944   : > { %v2064_v35 = vpop.xlane.xlu1 %2063 }
 0x945   : > { %v2091_v32 = vmul.f32 1.442695, %v2083_v27  ;;  %v2084_v37 = vsub.f32 %v1902_v38, %v2064_v35 }
 0x946   : > { %v2067_v47 = vpop.xlane.xlu0 %2066 }
 0x947   : > { %3301 = vpow2.f32 %v2091_v32  ;;  %v2093_v39 = vmul.f32 1.442695, %v2084_v37  ;;  %v2085_v45 = vsub.f32 %v1950_v36, %v2067_v47 }
 0x949   : > { %3303 = vpow2.f32 %v2093_v39  ;;  %v2095_v49 = vmul.f32 1.442695, %v2085_v45 }
 0x94a   : > { %v2073_v53 = vpop.xlane.xlu1 %2072  ;;  %v2070_v51 = vpop.xlane.xlu0 %2069 }
 0x94b   : > { %v2087_v57 = vsub.f32 %v2001_v55, %v2073_v53  ;;  %3305 = vpow2.f32 %v2095_v49  ;;  %v2086_v58 = vsub.f32 %v1953_v41, %v2070_v51 }
 0x94d   : > { %v2099_v60 = vmul.f32 1.442695, %v2087_v57  ;;  %v2097_v62 = vmul.f32 1.442695, %v2086_v58 }
 0x94e   : > { %v2079_v29 = vpop.xlane.xlu1 %2078  ;;  %v2076_v1 = vpop.xlane.xlu0 %2075 }
 0x94f   : > { %3307 = vpow2.f32 %v2099_v60  ;;  %v2089_v34 = vsub.f32 %v2052_v61, %v2079_v29  ;;  %v2088_v9 = vsub.f32 %v2004_v59, %v2076_v1 }
 0x950   : > { %3309 = vpow2.f32 %v2097_v62 }
 0x951   : > { %v3302_v38 = vpop.eup %3301  ;;  %v2103_v22 = vmul.f32 1.442695, %v2089_v34  ;;  %v2101_v21 = vmul.f32 1.442695, %v2088_v9 }
 0x952   : > { %v2107_v36 = vsel %vm606_vm3, %v3302_v38, 0.0  ;;  %v2152_v27 = vpop.permute.xlu1 %2151  ;;  %v2082_v35 = vpop.xlane.xlu0 %2081 }
 0x953   : > { %v3304_v30 = vpop.eup %3303  ;;  %2108 = vadd.xlane.f32.xlu1 %v2107_v36  ;;  %3311 = vpow2.f32 %v2103_v22  ;;  %v2090_v55 = vsub.f32 %v2055_v15, %v2082_v35  ;;  %3068 = vmatpush3.bf16.msra.mxu0 %v2152_v27 }
 0x954   : > { %v2110_v41 = vsel %vm606_vm3, %v3304_v30, 0.0  ;;  %3313 = vpow2.f32 %v2101_v21  ;;  %3079 = vmatprep.subr.bf16.mxu0 %v3341_v14 }
 0x955   : > { %2111 = vadd.xlane.f32.xlu0 %v2110_v41  ;;  %v3306_v61 = vpop.eup %3305  ;;  %v2105_v59 = vmul.f32 1.442695, %v2090_v55 }
 0x956   : > { %v2113_v32 = vsel %vm606_vm3, %v3306_v61, 0.0 }
 0x957   : > { %3315 = vpow2.f32 %v2105_v59  ;;  %2114 = vadd.xlane.f32.xlu1 %v2113_v32 }
 0x959   : > { %v3308_v37 = vpop.eup %3307 }
 0x95a   : > { %v3310_v39 = vpop.eup %3309  ;;  %v2119_v47 = vsel %vm606_vm3, %v3308_v37, 0.0 }
 0x95b   : > { %v2116_v45 = vsel %vm606_vm3, %v3310_v39, 0.0  ;;  %2120 = vadd.xlane.f32.xlu1 %v2119_v47 }
 0x95c   : > { %2117 = vadd.xlane.f32.xlu0 %v2116_v45 }
 0x95d   : > { %v3772_v15 = vpop.eup %3311 }
 0x95e   : > { %v3314_v49 = vpop.eup %3313  ;;  %v2125_v53 = vsel %vm606_vm3, %v3772_v15, 0.0 }
 0x95f   : > { %2126 = vadd.xlane.f32.xlu1 %v2125_v53  ;;  %v2122_v57 = vsel %vm606_vm3, %v3314_v49, 0.0 }
 0x960   : > { %2123 = vadd.xlane.f32.xlu0 %v2122_v57 }
 0x961   : > { %v3316_v51 = vpop.eup %3315 }
 0x962   : > { %v2128_v58 = vsel %vm606_vm3, %v3316_v51, 0.0 }
 0x964   : > { %2129 = vadd.xlane.f32.xlu0 %v2128_v58 }
 0x970   : > { %2245 = vrot.lane.b32.xlu1 %v3440_v43, %s3353_s23 }
 0x974   : > { %2292 = vrot.lane.b32.xlu1 %v3438_v42, %s3353_s23 }
 0x978   : > { %3145 = vrot.lane.b32.xlu1 %v3144_v8, %s3354_s26 }
 0x97a   : > { %2198 = vrot.lane.b32.xlu0 %v3432_v28, %s3353_s23 }
 0x97c   : > { %3155 = vrot.lane.b32.xlu1 %v3154_v20, %s3355_s27 }
 0x97e   : > { %3140 = vrot.lane.b32.xlu0 %v3139_v3, %s3354_s26 }
 0x980   : > { %3165 = vrot.lane.b32.xlu1 %v3164_v19, %s3354_s26 }
 0x982   : > { %3150 = vrot.lane.b32.xlu0 %v3149_v6, %s3355_s27 }
 0x986   : > { %3160 = vrot.lane.b32.xlu0 %v3159_v13, %s3354_s26 }
 0x9e0   : > { %v2109_v28 = vpop.xlane.xlu1 %2108 }
 0x9e1   : > { %3317 = vrcp.f32 %v2109_v28 }
 0x9e2   : > { %v2112_v42 = vpop.xlane.xlu0 %2111 }
 0x9e3   : > { %3319 = vrcp.f32 %v2112_v42 }
 0x9e4   : > { %v2115_v43 = vpop.xlane.xlu1 %2114 }
 0x9e5   : > { %3321 = vrcp.f32 %v2115_v43 }
 0x9e8   : > { %v2121_v0 = vpop.xlane.xlu1 %2120 }
 0x9e9   : > { %v2118_v2 = vpop.xlane.xlu0 %2117 }
 0x9ea   : > { %3323 = vrcp.f32 %v2118_v2 }
 0x9eb   : > { %v3318_v3 = vpop.eup %3317  ;;  %3325 = vrcp.f32 %v2121_v0 }
 0x9ec   : > { %v2127_v7 = vpop.xlane.xlu1 %2126  ;;  %v2139_v8 = vmul.f32 %v3318_v3, %v3302_v38 }
 0x9ed   : > { %v3320_v5 = vpop.eup %3319  ;;  %v2124_v18 = vpop.xlane.xlu0 %2123 }
 0x9ee   : > { %v2140_v16 = vmul.f32 %v3320_v5, %v3304_v30  ;;  %3327 = vrcp.f32 %v2124_v18  ;;  %v3201_v30 = vld [vmem:[%s3899_s3] sm:$0xff]  }
 0x9ef   : > { %3329 = vrcp.f32 %v2127_v7  ;;  %v3322_v13 = vpop.eup %3321 }
 0x9f0   : > { %v2147_v19 = vpack.c.bf16 %v2140_v16, %v2139_v8  ;;  %v2246_v10 = vpop.permute.xlu1 %2245  ;;  %v2141_v4 = vmul.f32 %v3322_v13, %v3306_v61 }
 0x9f1   : > { %v2130_v12 = vpop.xlane.xlu0 %2129 }
 0x9f2   : > { %3070 = vmatmul.mubr.msk.bf16.vlgmr.msra.gmra.mrb[60].mxu0 %vm606_vm3, %v2147_v19  ;;  %3331 = vrcp.f32 %v2130_v12 }
 0x9f3   : > { %3080 = vmatpush3.bf16.msra.mxu0 %v2246_v10  ;;  %3081 = vmatprep.mubr.msk.bf16.mxu0 %vm3342_vm1, %v3341_v14 }
 0x9f4   : > { %v3324_v63 = vpop.eup %3323  ;;  %v2293_v1 = vpop.permute.xlu1 %2292  ;;  %3091 = vmatprep.subr.bf16.mxu0 %v3201_v30 }
 0x9f5   : > { %v2142_v6 = vmul.f32 %v3324_v63, %v3310_v39  ;;  %v2199_v11 = vpop.permute.xlu0 %2198  ;;  %v3326_v17 = vpop.eup %3325 }
 0x9f6   : > { %3074 = vmatpush3.bf16.msra.mxu1 %v2199_v11  ;;  %v2143_v62 = vmul.f32 %v3326_v17, %v3308_v37 }
 0x9f7   : > { %v2148_v20 = vpack.c.bf16 %v2142_v6, %v2141_v4  ;;  %3085 = vmatprep.subr.bf16.mxu1 %v3341_v14 }
 0x9f8   : > { %v3328_v60 = vpop.eup %3327  ;;  %v3146_v43 = vpop.permute.xlu1 %3145 }
 0x9f9   : > { %v2144_v29 = vmul.f32 %v3328_v60, %v3314_v49  ;;  %3076 = vmatmul.mubr.msk.bf16.vlgmr.msra.gmra.mrb[60].mxu1 %vm606_vm3, %v2148_v20  ;;  %v3330_v34 = vpop.eup %3329  ;;  %v3148_v63 = vunpack.i.h.bf16 %v3146_v43  ;;  %v3147_v4 = vunpack.i.l.bf16 %v3146_v43  ;;  %v2787_v43 = vld [vmem:[%s3900_s4] ss:$0 sm:$0xff] }
 0x9fa   : > { %3086 = vmatpush3.bf16.msra.mxu1 %v2293_v1  ;;  %3087 = vmatprep.mubr.msk.bf16.mxu1 %vm3342_vm1, %v3341_v14  ;;  %v2145_v22 = vmul.f32 %v3330_v34, %v3772_v15  ;;  %v3202_v14 = vld [vmem:[%s3899_s3 + $0x8] sm:$0xff]  }
 0x9fb   : > { %v2149_v9 = vpack.c.bf16 %v2144_v29, %v2143_v62  ;;  %v2437_v60 = vsel %vm408_vm2, %v3552_v46, %v3147_v4 }
 0x9fc   : > { %v3332_v38 = vpop.eup %3331  ;;  %v3156_v5 = vpop.permute.xlu1 %3155 }
 0x9fd   : > { %v2146_v21 = vmul.f32 %v3332_v38, %v3316_v51  ;;  %3082 = vmatmul.mubr.msk.bf16.vlgmr.msra.gmra.mrb[64].mxu0 %vm606_vm3, %v2149_v9  ;;  %v3158_v17 = vunpack.i.h.bf16 %v3156_v5  ;;  %v3157_v20 = vunpack.i.l.bf16 %v3156_v5 }
 0x9fe   : > { %3092 = vmatpush3.bf16.msra.mxu0 %v3201_v30 }
 0x9ff   : > { %v2150_v36 = vpack.c.bf16 %v2146_v21, %v2145_v22  ;;  %3093 = vmatprep.subr.bf16.mxu0 %v3202_v14  ;;  %v2445_v38 = vsel %vm606_vm3, %v2437_v60, %v3157_v20 }
 0xa00   : > { %v3166_v6 = vpop.permute.xlu1 %3165 }
 0xa01   : > { %3088 = vmatmul.mubr.msk.bf16.vlgmr.msra.gmra.mrb[64].mxu1 %vm606_vm3, %v2150_v36 }
 0xa02   : > { %3094 = vmatpush3.bf16.msra.mxu0 %v3202_v14 }
 0xac5   : > { %v2191_v27 = vpop.f32.mrb[60].mxu0 }
 0xac6   : > { %v3071_v35 = vpop.f32.mrb[61].mxu0 }
 0xac7   : > { %v2194_v55 = vpop.f32.mrb[62].mxu0 }
 0xac8   : > { %v3169_v41 = vpack.i.bf16 %v2194_v55, %v2191_v27  ;;  %v3072_v61 = vpop.f32.mrb[63].mxu0  ;;  %v3168_v27 = vunpack.i.h.bf16 %v3166_v6 }
 0xaca   : > { %3170 = vrot.lane.b32.xlu0 %v3169_v41, %s3356_s10 }
 0xacc   : > { %v2238_v59 = vpop.f32.mrb[60].mxu1 }
 0xacd   : > { %v3077_v32 = vpop.f32.mrb[61].mxu1 }
 0xace   : > { %3175 = vrot.lane.b32.xlu0 %v3174_v26, %s3355_s27  ;;  %v2241_v37 = vpop.f32.mrb[62].mxu1  ;;  %v3141_v26 = vpop.permute.xlu0 %3140 }
 0xacf   : > { %v3179_v39 = vpack.i.bf16 %v2241_v37, %v2238_v59  ;;  %v3078_v47 = vpop.f32.mrb[63].mxu1  ;;  %v3143_v2 = vunpack.i.h.bf16 %v3141_v26  ;;  %v3142_v3 = vunpack.i.l.bf16 %v3141_v26 }
 0xad0   : > { %v2285_v45 = vpop.f32.mrb[64].mxu0 }
 0xad1   : > { %v3083_v15 = vpop.f32.mrb[65].mxu0  ;;  %3180 = vrot.lane.b32.xlu1 %v3179_v39, %s3356_s10  ;;  %v2436_v24 = vsel %vm408_vm2, %v3550_v44, %v3143_v2  ;;  %v2435_v31 = vsel %vm408_vm2, %v3548_v40, %v3142_v3  ;;  %v2438_v40 = vsel %vm408_vm2, %v3554_v48, %v3148_v63  ;;  %v3167_v48 = vunpack.i.l.bf16 %v3166_v6 }
 0xad2   : > { %v2288_v49 = vpop.f32.mrb[66].mxu0  ;;  %v3151_v42 = vpop.permute.xlu0 %3150  ;;  %v2446_v22 = vsel %vm606_vm3, %v2438_v40, %v3158_v17 }
 0xad3   : > { %v3189_v53 = vpack.i.bf16 %v2288_v49, %v2285_v45  ;;  %v3084_v57 = vpop.f32.mrb[67].mxu0  ;;  %v3153_v7 = vunpack.i.h.bf16 %v3151_v42  ;;  %v3152_v8 = vunpack.i.l.bf16 %v3151_v42 }
 0xad4   : > { %v2332_v51 = vpop.f32.mrb[64].mxu1 }
 0xad5   : > { %3190 = vrot.lane.b32.xlu0 %v3189_v53, %s3356_s10  ;;  %3185 = vrot.lane.b32.xlu1 %v3184_v33, %s3355_s27  ;;  %v3089_v58 = vpop.f32.mrb[65].mxu1  ;;  %v2443_v19 = vsel %vm606_vm3, %v2435_v31, %v3152_v8  ;;  %v2444_v10 = vsel %vm606_vm3, %v2436_v24, %v3153_v7 }
 0xad6   : > { %v2335_v28 = vpop.f32.mrb[66].mxu1  ;;  %v3161_v0 = vpop.permute.xlu0 %3160 }
 0xad7   : > { %v3194_v23 = vpack.i.bf16 %v2335_v28, %v2332_v51  ;;  %v3090_v25 = vpop.f32.mrb[67].mxu1  ;;  %v3163_v29 = vunpack.i.h.bf16 %v3161_v0  ;;  %v3162_v1 = vunpack.i.l.bf16 %v3161_v0 }
 0xad9   : > { %3195 = vrot.lane.b32.xlu1 %v3194_v23, %s3356_s10  ;;  %v2440_v41 = vsel %vm408_vm2, %v3558_v52, %v3163_v29  ;;  %v2439_v61 = vsel %vm408_vm2, %v3556_v50, %v3162_v1  ;;  %v2442_v52 = vsel %vm408_vm2, %v3562_v56, %v3168_v27  ;;  %v2441_v50 = vsel %vm408_vm2, %v3560_v54, %v3167_v48  ;;  %v3203_v56 = vld [vmem:[%s3901_s5] sm:$0xff]   ;;  %v3204_v54 = vld [vmem:[%s3901_s5 + $0x8] sm:$0xff]  }
 0xada   : > { %3103 = vmatprep.subr.bf16.mxu1 %v3203_v56 }
 0xadb   : > { %3104 = vmatpush3.bf16.msra.mxu1 %v3203_v56 }
 0xadc   : > { %3105 = vmatprep.subr.bf16.mxu1 %v3204_v54 }
 0xadf   : > { %3106 = vmatpush3.bf16.msra.mxu1 %v3204_v54 }
 0xb3c   : > { %v3171_v16 = vpop.permute.xlu0 %3170 }
 0xb3d   : > { %v3173_v33 = vunpack.i.h.bf16 %v3171_v16  ;;  %v3172_v18 = vunpack.i.l.bf16 %v3171_v16 }
 0xb3f   : > { %v2452_v12 = vsel %vm2451_vm4, %v2443_v19, %v3172_v18  ;;  %v2453_v13 = vsel %vm2451_vm4, %v2444_v10, %v3173_v33 }
 0xb40   : > { %v2460_v11 = vpack.c.bf16 %v2453_v13, %v2452_v12  ;;  %v3176_v44 = vpop.permute.xlu0 %3175 }
 0xb41   : > { %v3178_v21 = vunpack.i.h.bf16 %v3176_v44  ;;  %v3177_v36 = vunpack.i.l.bf16 %v3176_v44 }
 0xb42   : > { %3095 = vmatprep.mubr.msk.bf16.mxu0 %vm315_vm0, %v2460_v11 }
 0xb43   : > { %v3181_v62 = vpop.permute.xlu1 %3180  ;;  %v2447_v37 = vsel %vm606_vm3, %v2439_v61, %v3177_v36  ;;  %v2448_v39 = vsel %vm606_vm3, %v2440_v41, %v3178_v21 }
 0xb44   : > { %v3183_v34 = vunpack.i.h.bf16 %v3181_v62  ;;  %v3182_v9 = vunpack.i.l.bf16 %v3181_v62 }
 0xb46   : > { %v2455_v30 = vsel %vm2451_vm4, %v2446_v22, %v3183_v34  ;;  %v2454_v14 = vsel %vm2451_vm4, %v2445_v38, %v3182_v9  ;;  %v2794_v9 = vld [vmem:[%s3902_s6] ss:$0 sm:$0xff] }
 0xb47   : > { %v2461_v35 = vpack.c.bf16 %v2455_v30, %v2454_v14  ;;  %v3186_v55 = vpop.permute.xlu1 %3185  ;;  %v3191_v46 = vpop.permute.xlu0 %3190 }
 0xb48   : > { %v3193_v59 = vunpack.i.h.bf16 %v3191_v46  ;;  %v3192_v32 = vunpack.i.l.bf16 %v3191_v46  ;;  %v3188_v47 = vunpack.i.h.bf16 %v3186_v55  ;;  %v3187_v45 = vunpack.i.l.bf16 %v3186_v55 }
 0xb49   : > { %3096 = vmatmul.mubr.msk.bf16.vlgmr.msra.gmra.mrb[68].mxu0 %vm315_vm0, %v2461_v35 }
 0xb4a   : > { %v2456_v15 = vsel %vm2451_vm4, %v2447_v37, %v3192_v32  ;;  %v2457_v49 = vsel %vm2451_vm4, %v2448_v39, %v3193_v59  ;;  %v2450_v28 = vsel %vm606_vm3, %v2442_v52, %v3188_v47  ;;  %v2449_v23 = vsel %vm606_vm3, %v2441_v50, %v3187_v45 }
 0xb4b   : > { %v2462_v53 = vpack.c.bf16 %v2457_v49, %v2456_v15  ;;  %v3196_v57 = vpop.permute.xlu1 %3195 }
 0xb4c   : > { %v3198_v51 = vunpack.i.h.bf16 %v3196_v57  ;;  %v3197_v58 = vunpack.i.l.bf16 %v3196_v57 }
 0xb4d   : > { %3099 = vmatprep.mubr.msk.bf16.mxu0 %vm315_vm0, %v2462_v53 }
 0xb4e   : > { %v2459_v25 = vsel %vm2451_vm4, %v2450_v28, %v3198_v51  ;;  %v2458_v26 = vsel %vm2451_vm4, %v2449_v23, %v3197_v58 }
 0xb4f   : > { %v2463_v42 = vpack.c.bf16 %v2459_v25, %v2458_v26 }
 0xb51   : > { %3100 = vmatmul.mubr.msk.bf16.gmra.mrb[72].mxu0 %vm315_vm0, %v2463_v42 }
 0xc1c   : > { %v3097_v0 = vpop.f32.mrb[68].mxu0 }
 0xc1d   : > { %v2542_v2 = vadd.f32 %v3097_v0, %v2787_v43  ;;  %v2533_v3 = vpop.f32.mrb[69].mxu0 }
 0xc1e   : > { %v2534_v5 = vadd.f32 %v2787_v43, %v2533_v3  ;;  %v3098_v7 = vpop.f32.mrb[70].mxu0 }
 0xc1f   : > { %v2545_v8 = vadd.f32 %v3098_v7, %v2787_v43  ;;  %v2536_v16 = vpop.f32.mrb[71].mxu0  ;;  %v2566_v31 = vmax.f32 %v2542_v2, 0.0 }
 0xc20   : > { %v2537_v24 = vadd.f32 %v2787_v43, %v2536_v16  ;;  %v2564_v18 = vmax.f32 %v2534_v5, 0.0 }
 0xc21   : > { %v2567_v33 = vmax.f32 %v2545_v8, 0.0 }
 0xc22   : > { %v2565_v19 = vmax.f32 %v2537_v24, 0.0 }
 0xc23   : > { %v2573_v10 = vpack.c.bf16 %v2567_v33, %v2566_v31 }
 0xc24   : > { %v2572_v12 = vpack.c.bf16 %v2565_v19, %v2564_v18  ;;  %v3101_v13 = vpop.f32.mrb[72].mxu0 }
 0xc25   : > { %v2558_v63 = vadd.f32 %v3101_v13, %v2787_v43  ;;  %v2549_v4 = vpop.f32.mrb[73].mxu0 }
 0xc26   : > { %v2550_v6 = vadd.f32 %v2787_v43, %v2549_v4  ;;  %v3102_v11 = vpop.f32.mrb[74].mxu0  ;;  %3107 = vmatprep.mubr.msk.bf16.mxu1 %vm315_vm0, %v2572_v12 }
 0xc27   : > { %v2561_v17 = vadd.f32 %v3102_v11, %v2787_v43  ;;  %v2552_v20 = vpop.f32.mrb[75].mxu0  ;;  %3108 = vmatmul.mubr.msk.bf16.vlgmr.msra.gmra.mrb[68].mxu1 %vm315_vm0, %v2573_v10  ;;  %v2570_v40 = vmax.f32 %v2558_v63, 0.0 }
 0xc28   : > { %v2553_v44 = vadd.f32 %v2787_v43, %v2552_v20  ;;  %v2568_v62 = vmax.f32 %v2550_v6, 0.0 }
 0xc29   : > { %v2571_v60 = vmax.f32 %v2561_v17, 0.0 }
 0xc2a   : > { %v2569_v29 = vmax.f32 %v2553_v44, 0.0 }
 0xc2b   : > { %v2575_v1 = vpack.c.bf16 %v2571_v60, %v2570_v40 }
 0xc2c   : > { %v2574_v34 = vpack.c.bf16 %v2569_v29, %v2568_v62 }
 0xc2e   : > { %3111 = vmatprep.mubr.msk.bf16.mxu1 %vm315_vm0, %v2574_v34 }
 0xc2f   : > { %3112 = vmatmul.mubr.msk.bf16.gmra.mrb[72].mxu1 %vm315_vm0, %v2575_v1 }
 0xcfa   : > { %v3109_v38 = vpop.f32.mrb[68].mxu1 }
 0xcfb   : > { %v2654_v22 = vadd.f32 %v3109_v38, %v2794_v9  ;;  %v2645_v21 = vpop.f32.mrb[69].mxu1 }
 0xcfc   : > { %v2646_v36 = vadd.f32 %v2794_v9, %v2645_v21  ;;  %v3110_v30 = vpop.f32.mrb[70].mxu1 }
 0xcfd   : > { %2678 = vst.msk [vmem:[%s278_s21 + $0x10] sm:$0xff] %vm315_vm0, %v2654_v22  ;;  %v2657_v14 = vadd.f32 %v3110_v30, %v2794_v9  ;;  %v2648_v27 = vpop.f32.mrb[71].mxu1 }
 0xcfe   : > { %2676 = vst.msk [vmem:[%s278_s21] sm:$0xff] %vm315_vm0, %v2646_v36  ;;  %v2649_v48 = vadd.f32 %v2794_v9, %v2648_v27 }
 0xcff   : > { %2679 = vst.msk [vmem:[%s278_s21 + $0x18] sm:$0xff] %vm315_vm0, %v2657_v14 }
 0xd00   : > { %2677 = vst.msk [vmem:[%s278_s21 + $0x8] sm:$0xff] %vm315_vm0, %v2649_v48 }
 0xd02   : > { %v3113_v35 = vpop.f32.mrb[72].mxu1 }
 0xd03   : > { %v2670_v55 = vadd.f32 %v3113_v35, %v2794_v9  ;;  %v2661_v46 = vpop.f32.mrb[73].mxu1 }
 0xd04   : > { %v2662_v41 = vadd.f32 %v2794_v9, %v2661_v46  ;;  %v3114_v61 = vpop.f32.mrb[74].mxu1 }
 0xd05   : > { %2682 = vst.msk [vmem:[%s278_s21 + $0x30] sm:$0xff] %vm315_vm0, %v2670_v55  ;;  %v2673_v59 = vadd.f32 %v3114_v61, %v2794_v9  ;;  %v2664_v32 = vpop.f32.mrb[75].mxu1 }
 0xd06   : > { %2680 = vst.msk [vmem:[%s278_s21 + $0x20] sm:$0xff] %vm315_vm0, %v2662_v41  ;;  %v2665_v37 = vadd.f32 %v2794_v9, %v2664_v32 }
 0xd07   : > { %2683 = vst.msk [vmem:[%s278_s21 + $0x38] sm:$0xff] %vm315_vm0, %v2673_v59 }
 0xd08   : > { %2681 = vst.msk [vmem:[%s278_s21 + $0x28] sm:$0xff] %vm315_vm0, %v2665_v37 }
 0xd09 PF: > { %s17_s24 = sadd.s32 1, %s3339_s24  }
 0xd0a   : > { %p14_p4 = scmp.ge.s32.totalorder %s17_s24, 4  }
 0xd0c   :  { %16 = sbr.rel (!%p14_p4) target bundleno = 1 (0x1), region = 78 }

</bundles_post_ra>
